<compile_context>
chip_gen: v7x
topology: tpu7x:2x2x1
jax: 0.10.0
libtpu: 0.0.40
codegen_flags: <defaults>
</compile_context>

<pallas_src>
import functools
import math
import random

import jax
import jax.numpy as jnp
from jax.experimental import pallas as pl
from jax.experimental.pallas import tpu as pltpu

MAX_OUTPUT_LENGTH = 50
NEG_NUM_MASK = -1.0e12   # Score masked_fill value
NEG_SEQ_MASK = -1.0e9    # attention padding mask


def _round_up(x, m):
    return ((x + m - 1) // m) * m


def _default_vmem_limit_bytes():
    # v5e/v6e: 128 MiB physical VMEM per TensorCore; v7x: 64 MiB.
    try:
        cap = int(pltpu.get_tpu_info().vmem_capacity_bytes)
    except Exception:
        cap = 64 * 1024 * 1024
    return max(32 * 1024 * 1024, min(100 * 1024 * 1024, int(cap * 0.8)))


# ----------------------------------------------------------------------------
# Fused Pallas kernel: one grid step == one decode timestep (decoder + Score)
# ----------------------------------------------------------------------------
def fused_decode_kernel(emb_ref,                       # (Bt, Hp)      bf16, streamed per step
                        enc_ref,                       # (Bt, S, Hp)   bf16, resident
                        nproj_ref,                     # (Bt, Lp, Hp)  bf16, resident (hoisted score proj + bias)
                        smask_ref, nmask_ref,          # (Bt, S), (Bt, Lp) f32 additive masks
                        h0_ref, f0_ref,                # (Bt, Hp) f32 initial hidden / feed
                        dec_w_ref, dec_b_ref,          # (4Hp, Hp) bf16, (1, Hp) f32
                        wh_ref, ws_ref,                # (Hp, Hp) bf16, (1, Hp) f32
                        out_ref,                       # (Bt, Lp) f32 (time dim squeezed)
                        hid_sc, feed_sc,               # VMEM scratch (Bt, Hp) f32
                        *, scale):
    t = pl.program_id(1)
    Bt, Lp, Hp = nproj_ref.shape

    # Initialize the carried decoder state at the first timestep of this batch block.
    @pl.when(t == 0)
    def _():
        hid_sc[...] = h0_ref[...]
        feed_sc[...] = f0_ref[...]

    emb = emb_ref[...]                                   # (Bt, Hp) bf16 (pre-gathered in wrapper)
    hid = hid_sc[...]                                    # (Bt, Hp) f32
    feed = feed_sc[...]                                  # (Bt, Hp) f32
    enc = enc_ref[...].astype(jnp.float32)               # (Bt, S, Hp)

    # --- attention over encoder outputs, kept on the VPU (per-batch M=1 matvecs
    #     would waste the MXU); softmax denom via EUP reciprocal ---
    scores = jnp.sum(hid[:, None, :] * enc, axis=-1) * scale        # (Bt, S)
    scores = scores + smask_ref[...]                                # additive -1e9 mask
    m = jnp.max(scores, axis=-1, keepdims=True)
    p = jnp.exp(scores - m)
    w = p * pl.reciprocal(jnp.sum(p, axis=-1, keepdims=True), approx=True)
    ctx = jnp.sum(w[:, :, None] * enc, axis=1)                      # (Bt, Hp)

    # --- decoder cell: one fused K=4H bf16 MXU matmul against packed weights ---
    # TODO(synk): decoder module is undefined in the reference; this masked-attention
    #             tanh recurrence is a deterministic stand-in.
    x = jnp.concatenate([emb,
                         hid.astype(jnp.bfloat16),
                         ctx.astype(jnp.bfloat16),
                         feed.astype(jnp.bfloat16)], axis=-1)       # (Bt, 4Hp) bf16
    new_h = jnp.tanh(jnp.dot(x, dec_w_ref[...],
                             preferred_element_type=jnp.float32)
                     + dec_b_ref[...])                              # (Bt, Hp) f32
    hid_sc[...] = new_h
    feed_sc[...] = new_h         # feed_hidden[-1] is always the latest hidden

    # --- Score: only the hidden projection + tanh + ws reduction remain per step
    #     (the big (B*Lp,H)@(H,H) num-embedding projection was hoisted) ---
    hproj = jnp.dot(new_h.astype(jnp.bfloat16), wh_ref[...],
                    preferred_element_type=jnp.float32)             # (Bt, Hp)
    e = jnp.tanh(nproj_ref[...].astype(jnp.float32) + hproj[:, None, :])   # (Bt, Lp, Hp)
    ws = ws_ref[...].astype(jnp.float32)                            # (1, Hp)
    s = jnp.sum(e * ws[:, None, :], axis=-1)                        # (Bt, Lp)
    out_ref[...] = s + nmask_ref[...]                               # additive -1e12 mask


# ----------------------------------------------------------------------------
# Wrapper: single pallas_call for the whole teacher-forcing decode
# ----------------------------------------------------------------------------
def fused_teacher_forcing_decode(trg, word_dict_vec, num_mask, enc_bsh, seq_mask,
                                 h0, f0, params, batch_block=None,
                                 vmem_limit_bytes=None):
    T = trg.shape[0]
    B, L, H = word_dict_vec.shape
    S = enc_bsh.shape[1]
    Hp = _round_up(H, 128)          # lane-dense hidden
    Lp = _round_up(L, 128)          # lane-dense score output
    n_steps = T - 1

    Bt = B if batch_block is None else batch_block
    assert B % Bt == 0, (B, Bt)
    Bb = B // Bt

    f32, bf16 = jnp.float32, jnp.bfloat16

    def pad_h(x):                   # zero-pad last (hidden) dim H -> Hp
        return jnp.pad(x, [(0, 0)] * (x.ndim - 1) + [(0, Hp - H)])

    # ---- hoisted, time-invariant precompute (once per forward, not per step) ----
    # (1) embedding gather for every teacher-forcing input token: (T-1, B, Hp)
    tok = trg[:n_steps].astype(jnp.int32)                           # (T-1, B)
    emb_seq = word_dict_vec[jnp.arange(B)[None, :], tok]            # (T-1, B, H)
    emb_seq = pad_h(emb_seq).astype(bf16)

    # (2) Score num-embedding projection with the bias folded in: (B, Lp, Hp)
    nproj = jnp.einsum("blh,hk->blk", word_dict_vec,
                       params["score_wn"]) + params["score_b"]      # (B, L, H) f32
    nproj = jnp.pad(nproj, ((0, 0), (0, Lp - L), (0, Hp - H))).astype(bf16)

    # (3) additive masks
    nmask_p = jnp.pad(num_mask, ((0, 0), (0, Lp - L)), constant_values=1.0)
    nmask_add = (nmask_p * jnp.float32(NEG_NUM_MASK)).astype(f32)
    smask_add = (seq_mask * jnp.float32(NEG_SEQ_MASK)).astype(f32)

    # (4) residents, padded + bf16 on the MXU path
    enc_p = pad_h(enc_bsh).astype(bf16)                             # (B, S, Hp)
    dec_w = jnp.concatenate(
        [jnp.pad(params[k], ((0, Hp - H), (0, Hp - H)))
         for k in ("dec_w1", "dec_w2", "dec_w3", "dec_w4")],
        axis=0).astype(bf16)                                        # (4Hp, Hp)
    dec_b = pad_h(params["dec_b"]).astype(f32)                      # (1, Hp)
    wh = jnp.pad(params["score_wh"], ((0, Hp - H), (0, Hp - H))).astype(bf16)
    ws = pad_h(params["score_ws"]).astype(f32)                      # (1, Hp)
    h0_p = pad_h(h0).astype(f32)
    f0_p = pad_h(f0).astype(f32)

    kernel = functools.partial(fused_decode_kernel, scale=1.0 / math.sqrt(float(H)))

    grid_spec = pltpu.PrefetchScalarGridSpec(
        num_scalar_prefetch=0,
        grid=(Bb, n_steps),
        in_specs=[
            pl.BlockSpec((None, Bt, Hp), lambda bi, t: (t, bi, 0)),   # streamed emb (per step)
            pl.BlockSpec((Bt, S, Hp), lambda bi, t: (bi, 0, 0)),      # encoder outputs (resident)
            pl.BlockSpec((Bt, Lp, Hp), lambda bi, t: (bi, 0, 0)),     # hoisted score projection
            pl.BlockSpec((Bt, S), lambda bi, t: (bi, 0)),             # seq mask (additive)
            pl.BlockSpec((Bt, Lp), lambda bi, t: (bi, 0)),            # num mask (additive)
            pl.BlockSpec((Bt, Hp), lambda bi, t: (bi, 0)),            # initial hidden
            pl.BlockSpec((Bt, Hp), lambda bi, t: (bi, 0)),            # initial feed (tanh(problem))
            pl.BlockSpec((4 * Hp, Hp), lambda bi, t: (0, 0)),         # packed decoder weights
            pl.BlockSpec((1, Hp), lambda bi, t: (0, 0)),              # decoder bias
            pl.BlockSpec((Hp, Hp), lambda bi, t: (0, 0)),             # score_wh
            pl.BlockSpec((1, Hp), lambda bi, t: (0, 0)),              # score_ws
        ],
        out_specs=pl.BlockSpec((None, Bt, Lp), lambda bi, t: (t, bi, 0)),
        scratch_shapes=[pltpu.VMEM((Bt, Hp), jnp.float32),            # hidden carry
                        pltpu.VMEM((Bt, Hp), jnp.float32)],           # feed carry
    )

    if vmem_limit_bytes is None:
        vmem_limit_bytes = _default_vmem_limit_bytes()

    out_pad = pl.pallas_call(
        kernel,
        out_shape=jax.ShapeDtypeStruct((n_steps, B, Lp), jnp.float32),
        grid_spec=grid_spec,
        compiler_params=pltpu.CompilerParams(
            dimension_semantics=("parallel", "arbitrary"),   # batch parallel, time sequential
            vmem_limit_bytes=vmem_limit_bytes),
    )(emb_seq, enc_p, nproj, smask_add, nmask_add, h0_p, f0_p,
      dec_w, dec_b, wh, ws)

    return out_pad[:, :, :L]


# ----------------------------------------------------------------------------
# Plain-JAX glue (gathers, mask construction, synthetic encoder)
# ----------------------------------------------------------------------------
def get_all_number_encoder_outputs(encoder_out, num_pos, batch_size, num_size, hidden_size):
    # encoder_out: (S, B, H)
    sen_len = encoder_out.shape[0]
    indices, mask = [], []
    for b in range(batch_size):
        pos = num_pos[b]
        for i in pos:
            indices.append(i + b * sen_len)
            mask.append(0.0)
        indices += [0] * (num_size - len(pos))
        mask += [1.0] * (num_size - len(pos))
    idx = jnp.array(indices, dtype=jnp.int32)
    m = jnp.array(mask, dtype=jnp.float32).reshape(batch_size, num_size, 1)
    all_emb = jnp.transpose(encoder_out, (1, 0, 2)).reshape(-1, hidden_size)
    all_num = all_emb[idx].reshape(batch_size, num_size, hidden_size)
    return all_num * (1.0 - m)  # masked_fill_(masked_index, 0.0)


def encoder_forward(src, input_length, params):
    # TODO(synk): encoder module is undefined in the reference; deterministic stand-in.
    emb = params["enc_emb"][src]                                  # (S, B, H)
    enc_out = jnp.tanh(emb @ params["enc_w"] + params["enc_b"])   # (S, B, H)
    enc_hidden = jnp.mean(enc_out, axis=0, keepdims=True)         # (1, B, H)
    problem = jnp.mean(enc_out, axis=0)                           # (B, H)
    return enc_out, enc_hidden, problem


class Seq2SeqPallas:
    def __init__(self, params, stuff_size, hidden_size, beam_size):
        self.params = params
        self.stuff_size = stuff_size
        self.hidden_size = hidden_size
        self.beam_size = beam_size

    def forward(self, src, input_length, trg, num_pos, teacher_forcing):
        max_len_in = max(input_length)
        seq_mask = jnp.array(
            [[0.0] * i + [1.0] * (max_len_in - i) for i in input_length],
            dtype=jnp.float32)

        copy_num_len = [len(p) for p in num_pos]
        num_size = max(copy_num_len)
        num_mask = jnp.array(
            [[0.0] * self.stuff_size + [0.0] * len(p) + [1.0] * (num_size - len(p))
             for p in num_pos],
            dtype=jnp.float32)

        batch_size = src.shape[1]
        assert len(num_pos) == batch_size

        encoder_out, encoder_hidden, problem = encoder_forward(src, input_length, self.params)

        word_dict_vec = jnp.broadcast_to(
            self.params["embedding_weight"][None],
            (batch_size, self.stuff_size, self.hidden_size))
        num_embedded = get_all_number_encoder_outputs(
            encoder_out, num_pos, batch_size, num_size, self.hidden_size)
        word_dict_vec = jnp.concatenate((word_dict_vec, num_embedded), axis=1)  # (B, L, H)

        # Hoisted (once per forward, not per timestep).
        enc_bsh = jnp.transpose(encoder_out, (1, 0, 2))            # (B, S, H)
        S_enc = enc_bsh.shape[1]
        if S_enc > seq_mask.shape[1]:                              # pad mask to encoder length
            seq_mask = jnp.pad(seq_mask, ((0, 0), (0, S_enc - seq_mask.shape[1])),
                               constant_values=1.0)
        h0 = encoder_hidden[0]                                     # (B, H)
        f0 = jnp.tanh(problem)                                     # (B, H)  (== feed_hidden[-1] at t=0)

        if teacher_forcing > random.random():
            decoder_out = fused_teacher_forcing_decode(
                trg.astype(jnp.int32), word_dict_vec, num_mask, enc_bsh, seq_mask,
                h0, f0, self.params)                               # (T-1, B, L)
        else:
            # TODO(synk): beam-search branch (host-side beam bookkeeping / topk) not ported.
            raise NotImplementedError("beam-search decode branch not ported to Pallas")
        return decoder_out


# ----------------------------------------------------------------------------
# Deterministic parameter init + smoke test
# ----------------------------------------------------------------------------
def init_params(key, vocab, stuff_size, hidden):
    ks = jax.random.split(key, 12)
    s = 0.1
    return {
        "embedding_weight": s * jax.random.normal(ks[0], (stuff_size, hidden), jnp.float32),
        "score_wh": s * jax.random.normal(ks[1], (hidden, hidden), jnp.float32),
        "score_wn": s * jax.random.normal(ks[2], (hidden, hidden), jnp.float32),
        "score_b":  s * jax.random.normal(ks[3], (1, hidden), jnp.float32),
        "score_ws": s * jax.random.normal(ks[4], (1, hidden), jnp.float32),
        "enc_emb":  s * jax.random.normal(ks[5], (vocab, hidden), jnp.float32),
        "enc_w":    s * jax.random.normal(ks[6], (hidden, hidden), jnp.float32),
        "enc_b":    s * jax.random.normal(ks[7], (hidden,), jnp.float32),
        "dec_w1":   s * jax.random.normal(ks[8], (hidden, hidden), jnp.float32),
        "dec_w2":   s * jax.random.normal(ks[9], (hidden, hidden), jnp.float32),
        "dec_w3":   s * jax.random.normal(ks[10], (hidden, hidden), jnp.float32),
        "dec_w4":   s * jax.random.normal(ks[11], (hidden, hidden), jnp.float32),
        "dec_b":    jnp.zeros((1, hidden), jnp.float32),
    }


if __name__ == "__main__":
    random.seed(0)
    key = jax.random.PRNGKey(0)
    B, S, H = 2, 8, 32
    stuff_size, vocab = 5, 20
    num_pos = [[1, 3], [2]]            # num_size = 2 -> output_size L = 7
    input_length = [8, 6]
    T = 6                              # target length

    k_src, k_trg, k_par = jax.random.split(key, 3)
    src = jax.random.randint(k_src, (S, B), 0, vocab, dtype=jnp.int32)
    trg = jax.random.randint(k_trg, (T, B), 0, stuff_size + 2, dtype=jnp.int32)

    params = init_params(k_par, vocab, stuff_size, H)
    model = Seq2SeqPallas(params, stuff_size=stuff_size, hidden_size=H, beam_size=3)

    out = model.forward(src, input_length, trg, num_pos, teacher_forcing=1.0)
    out = jax.block_until_ready(out)
    assert out.shape == (T - 1, B, stuff_size + 2), out.shape
    assert bool(jnp.all(jnp.isfinite(out)))
    print("KERNEL_OK")
</pallas_src>

<mosaic_0001>
module attributes {stable_mosaic.version = 11 : i64} {
  func.func @fused_decode_kernel(%arg0: i32, %arg1: i32, %arg2: memref<1x2x128xbf16, #tpu.memory_space<vmem>>, %arg3: memref<2x8x128xbf16, #tpu.memory_space<vmem>>, %arg4: memref<2x128x128xbf16, #tpu.memory_space<vmem>>, %arg5: memref<2x8xf32, #tpu.memory_space<vmem>>, %arg6: memref<2x128xf32, #tpu.memory_space<vmem>>, %arg7: memref<2x128xf32, #tpu.memory_space<vmem>>, %arg8: memref<2x128xf32, #tpu.memory_space<vmem>>, %arg9: memref<512x128xbf16, #tpu.memory_space<vmem>>, %arg10: memref<1x128xf32, #tpu.memory_space<vmem>>, %arg11: memref<128x128xbf16, #tpu.memory_space<vmem>>, %arg12: memref<1x128xf32, #tpu.memory_space<vmem>>, %arg13: memref<1x2x128xf32, #tpu.memory_space<vmem>>, %arg14: memref<2x128xf32, #tpu.memory_space<vmem>>, %arg15: memref<2x128xf32, #tpu.memory_space<vmem>>) attributes {dimension_semantics = [#tpu.dimension_semantics<parallel>, #tpu.dimension_semantics<arbitrary>], iteration_bounds = array<i64: 1, 5>, scalar_prefetch = 0 : i64, scratch_operands = 2 : i64, tpu.core_type = #tpu.core_type<tc>, window_params = [{transform_indices = @transform_0, window_bounds = array<i64: 1, 2, 128>}, {transform_indices = @transform_1, window_bounds = array<i64: 2, 8, 128>}, {transform_indices = @transform_2, window_bounds = array<i64: 2, 128, 128>}, {transform_indices = @transform_3, window_bounds = array<i64: 2, 8>}, {transform_indices = @transform_4, window_bounds = array<i64: 2, 128>}, {transform_indices = @transform_5, window_bounds = array<i64: 2, 128>}, {transform_indices = @transform_6, window_bounds = array<i64: 2, 128>}, {pipeline_mode = #tpu.pipeline_mode<synchronous>, transform_indices = @transform_7, window_bounds = array<i64: 512, 128>}, {pipeline_mode = #tpu.pipeline_mode<synchronous>, transform_indices = @transform_8, window_bounds = array<i64: 1, 128>}, {pipeline_mode = #tpu.pipeline_mode<synchronous>, transform_indices = @transform_9, window_bounds = array<i64: 128, 128>}, {pipeline_mode = #tpu.pipeline_mode<synchronous>, transform_indices = @transform_10, window_bounds = array<i64: 1, 128>}, {transform_indices = @transform_11, window_bounds = array<i64: 1, 2, 128>}]} {
    %c0_i32 = arith.constant 0 : i32
    %0 = arith.cmpi eq, %arg1, %c0_i32 : i32
    %1 = arith.extui %0 : i1 to i32
    %c0_i32_0 = arith.constant 0 : i32
    %2 = arith.cmpi ne, %1, %c0_i32_0 : i32
    scf.if %2 {
      %c0_39 = arith.constant 0 : index
      %c0_40 = arith.constant 0 : index
      %62 = vector.load %arg7[%c0_39, %c0_40] : memref<2x128xf32, #tpu.memory_space<vmem>>, vector<2x128xf32>
      %c0_41 = arith.constant 0 : index
      %c0_42 = arith.constant 0 : index
      %63 = vector.load %arg14[%c0_41, %c0_42] : memref<2x128xf32, #tpu.memory_space<vmem>>, vector<2x128xf32>
      tpu.vector_store %arg14[%c0_41, %c0_42], %62 {strides = array<i32>} : memref<2x128xf32, #tpu.memory_space<vmem>>, vector<2x128xf32>,
      %c0_43 = arith.constant 0 : index
      %c0_44 = arith.constant 0 : index
      %64 = vector.load %arg8[%c0_43, %c0_44] : memref<2x128xf32, #tpu.memory_space<vmem>>, vector<2x128xf32>
      %c0_45 = arith.constant 0 : index
      %c0_46 = arith.constant 0 : index
      %65 = vector.load %arg15[%c0_45, %c0_46] : memref<2x128xf32, #tpu.memory_space<vmem>>, vector<2x128xf32>
      tpu.vector_store %arg15[%c0_45, %c0_46], %64 {strides = array<i32>} : memref<2x128xf32, #tpu.memory_space<vmem>>, vector<2x128xf32>,
    } else {
    }
    %c0 = arith.constant 0 : index
    %c0_1 = arith.constant 0 : index
    %c0_2 = arith.constant 0 : index
    %3 = vector.load %arg2[%c0, %c0_1, %c0_2] : memref<1x2x128xbf16, #tpu.memory_space<vmem>>, vector<1x2x128xbf16>
    %4 = vector.shape_cast %3 : vector<1x2x128xbf16> to vector<2x128xbf16>
    %c0_3 = arith.constant 0 : index
    %c0_4 = arith.constant 0 : index
    %5 = vector.load %arg14[%c0_3, %c0_4] : memref<2x128xf32, #tpu.memory_space<vmem>>, vector<2x128xf32>
    %c0_5 = arith.constant 0 : index
    %c0_6 = arith.constant 0 : index
    %6 = vector.load %arg15[%c0_5, %c0_6] : memref<2x128xf32, #tpu.memory_space<vmem>>, vector<2x128xf32>
    %c0_7 = arith.constant 0 : index
    %c0_8 = arith.constant 0 : index
    %c0_9 = arith.constant 0 : index
    %7 = vector.load %arg3[%c0_7, %c0_8, %c0_9] : memref<2x8x128xbf16, #tpu.memory_space<vmem>>, vector<2x8x128xbf16>
    %8 = arith.extf %7 : vector<2x8x128xbf16> to vector<2x8x128xf32>
    %9 = vector.shape_cast %5 : vector<2x128xf32> to vector<2x1x128xf32>
    %10 = vector.broadcast %9 : vector<2x1x128xf32> to vector<2x8x128xf32>
    %11 = arith.mulf %10, %8 : vector<2x8x128xf32>
    %cst = arith.constant dense<0.000000e+00> : vector<2x8xf32>
    %12 = vector.multi_reduction <add>, %11, %cst [2] : vector<2x8x128xf32> to vector<2x8xf32>
    %cst_10 = arith.constant 0.176776692 : f32
    %13 = vector.broadcast %cst_10 : f32 to vector<2x8xf32>
    %14 = arith.mulf %12, %13 : vector<2x8xf32>
    %c0_11 = arith.constant 0 : index
    %c0_12 = arith.constant 0 : index
    %15 = vector.load %arg5[%c0_11, %c0_12] : memref<2x8xf32, #tpu.memory_space<vmem>>, vector<2x8xf32>
    %16 = arith.addf %14, %15 : vector<2x8xf32>
    %cst_13 = arith.constant dense<0xFF800000> : vector<2xf32>
    %17 = vector.multi_reduction <maximumf>, %16, %cst_13 [1] : vector<2x8xf32> to vector<2xf32>
    %18 = vector.shape_cast %17 : vector<2xf32> to vector<2x1xf32>
    %19 = vector.broadcast %18 : vector<2x1xf32> to vector<2x8xf32>
    %20 = arith.subf %16, %19 : vector<2x8xf32>
    %21 = math.exp %20 : vector<2x8xf32>
    %cst_14 = arith.constant dense<0.000000e+00> : vector<2xf32>
    %22 = vector.multi_reduction <add>, %21, %cst_14 [1] : vector<2x8xf32> to vector<2xf32>
    %23 = vector.shape_cast %22 : vector<2xf32> to vector<2x1xf32>
    %24 = tpu.reciprocal %23 {approx = true} : vector<2x1xf32> -> vector<2x1xf32>
    %25 = vector.broadcast %24 : vector<2x1xf32> to vector<2x8xf32>
    %26 = arith.mulf %21, %25 : vector<2x8xf32>
    %27 = vector.shape_cast %26 : vector<2x8xf32> to vector<2x8x1xf32>
    %28 = vector.broadcast %27 : vector<2x8x1xf32> to vector<2x8x128xf32>
    %29 = arith.mulf %28, %8 : vector<2x8x128xf32>
    %cst_15 = arith.constant dense<0.000000e+00> : vector<2x128xf32>
    %30 = vector.multi_reduction <add>, %29, %cst_15 [1] : vector<2x8x128xf32> to vector<2x128xf32>
    %31 = arith.truncf %5 : vector<2x128xf32> to vector<2x128xbf16>
    %32 = arith.truncf %30 : vector<2x128xf32> to vector<2x128xbf16>
    %33 = arith.truncf %6 : vector<2x128xf32> to vector<2x128xbf16>
    %34 = tpu.concatenate %4, %31, %32, %33 in 1 : vector<2x128xbf16>, vector<2x128xbf16>, vector<2x128xbf16>, vector<2x128xbf16> -> vector<2x512xbf16>
    %c0_16 = arith.constant 0 : index
    %c0_17 = arith.constant 0 : index
    %35 = vector.load %arg9[%c0_16, %c0_17] : memref<512x128xbf16, #tpu.memory_space<vmem>>, vector<512x128xbf16>
    %cst_18 = arith.constant dense<0.000000e+00> : vector<2x128xf32>
    %36 = tpu.matmul %34, %35, %cst_18 {dimension_numbers = #tpu.dot_dimension_numbers<[1], [0], [0], [1], [0, 0, 1, 1], [], []>} : vector<2x512xbf16>, vector<512x128xbf16>, vector<2x128xf32> -> vector<2x128xf32>
    %c0_19 = arith.constant 0 : index
    %c0_20 = arith.constant 0 : index
    %37 = vector.load %arg10[%c0_19, %c0_20] : memref<1x128xf32, #tpu.memory_space<vmem>>, vector<1x128xf32>
    %38 = vector.broadcast %37 : vector<1x128xf32> to vector<2x128xf32>
    %39 = arith.addf %36, %38 : vector<2x128xf32>
    %40 = math.tanh %39 : vector<2x128xf32>
    %c0_21 = arith.constant 0 : index
    %c0_22 = arith.constant 0 : index
    %41 = vector.load %arg14[%c0_21, %c0_22] : memref<2x128xf32, #tpu.memory_space<vmem>>, vector<2x128xf32>
    tpu.vector_store %arg14[%c0_21, %c0_22], %40 {strides = array<i32>} : memref<2x128xf32, #tpu.memory_space<vmem>>, vector<2x128xf32>,
    %c0_23 = arith.constant 0 : index
    %c0_24 = arith.constant 0 : index
    %42 = vector.load %arg15[%c0_23, %c0_24] : memref<2x128xf32, #tpu.memory_space<vmem>>, vector<2x128xf32>
    tpu.vector_store %arg15[%c0_23, %c0_24], %40 {strides = array<i32>} : memref<2x128xf32, #tpu.memory_space<vmem>>, vector<2x128xf32>,
    %43 = arith.truncf %40 : vector<2x128xf32> to vector<2x128xbf16>
    %c0_25 = arith.constant 0 : index
    %c0_26 = arith.constant 0 : index
    %44 = vector.load %arg11[%c0_25, %c0_26] : memref<128x128xbf16, #tpu.memory_space<vmem>>, vector<128x128xbf16>
    %cst_27 = arith.constant dense<0.000000e+00> : vector<2x128xf32>
    %45 = tpu.matmul %43, %44, %cst_27 {dimension_numbers = #tpu.dot_dimension_numbers<[1], [0], [0], [1], [0, 0, 1, 1], [], []>} : vector<2x128xbf16>, vector<128x128xbf16>, vector<2x128xf32> -> vector<2x128xf32>
    %c0_28 = arith.constant 0 : index
    %c0_29 = arith.constant 0 : index
    %c0_30 = arith.constant 0 : index
    %46 = vector.load %arg4[%c0_28, %c0_29, %c0_30] : memref<2x128x128xbf16, #tpu.memory_space<vmem>>, vector<2x128x128xbf16>
    %47 = arith.extf %46 : vector<2x128x128xbf16> to vector<2x128x128xf32>
    %48 = vector.shape_cast %45 : vector<2x128xf32> to vector<2x1x128xf32>
    %49 = vector.broadcast %48 : vector<2x1x128xf32> to vector<2x128x128xf32>
    %50 = arith.addf %47, %49 : vector<2x128x128xf32>
    %51 = math.tanh %50 : vector<2x128x128xf32>
    %c0_31 = arith.constant 0 : index
    %c0_32 = arith.constant 0 : index
    %52 = vector.load %arg12[%c0_31, %c0_32] : memref<1x128xf32, #tpu.memory_space<vmem>>, vector<1x128xf32>
    %53 = vector.shape_cast %52 : vector<1x128xf32> to vector<1x1x128xf32>
    %54 = vector.broadcast %53 : vector<1x1x128xf32> to vector<2x128x128xf32>
    %55 = arith.mulf %51, %54 : vector<2x128x128xf32>
    %cst_33 = arith.constant dense<0.000000e+00> : vector<2x128xf32>
    %56 = vector.multi_reduction <add>, %55, %cst_33 [2] : vector<2x128x128xf32> to vector<2x128xf32>
    %c0_34 = arith.constant 0 : index
    %c0_35 = arith.constant 0 : index
    %57 = vector.load %arg6[%c0_34, %c0_35] : memref<2x128xf32, #tpu.memory_space<vmem>>, vector<2x128xf32>
    %58 = arith.addf %56, %57 : vector<2x128xf32>
    %c0_36 = arith.constant 0 : index
    %c0_37 = arith.constant 0 : index
    %c0_38 = arith.constant 0 : index
    %59 = vector.load %arg13[%c0_36, %c0_37, %c0_38] : memref<1x2x128xf32, #tpu.memory_space<vmem>>, vector<1x2x128xf32>
    %60 = vector.shape_cast %59 : vector<1x2x128xf32> to vector<2x128xf32>
    %61 = vector.shape_cast %58 : vector<2x128xf32> to vector<1x2x128xf32>
    tpu.vector_store %arg13[%c0_36, %c0_37, %c0_38], %61 {strides = array<i32>} : memref<1x2x128xf32, #tpu.memory_space<vmem>>, vector<1x2x128xf32>,
    return
  }
  func.func @transform_0(%arg0: i32, %arg1: i32) -> (i32, i32, i32) {
    %c0_i32 = arith.constant 0 : i32
    %c0_i32_0 = arith.constant 0 : i32
    return %arg1, %arg0, %c0_i32 : i32, i32, i32
  }
  func.func @transform_1(%arg0: i32, %arg1: i32) -> (i32, i32, i32) {
    %c0_i32 = arith.constant 0 : i32
    %c0_i32_0 = arith.constant 0 : i32
    %c0_i32_1 = arith.constant 0 : i32
    return %arg0, %c0_i32, %c0_i32_0 : i32, i32, i32
  }
  func.func @transform_2(%arg0: i32, %arg1: i32) -> (i32, i32, i32) {
    %c0_i32 = arith.constant 0 : i32
    %c0_i32_0 = arith.constant 0 : i32
    %c0_i32_1 = arith.constant 0 : i32
    return %arg0, %c0_i32, %c0_i32_0 : i32, i32, i32
  }
  func.func @transform_3(%arg0: i32, %arg1: i32) -> (i32, i32) {
    %c0_i32 = arith.constant 0 : i32
    %c0_i32_0 = arith.constant 0 : i32
    return %arg0, %c0_i32 : i32, i32
  }
  func.func @transform_4(%arg0: i32, %arg1: i32) -> (i32, i32) {
    %c0_i32 = arith.constant 0 : i32
    %c0_i32_0 = arith.constant 0 : i32
    return %arg0, %c0_i32 : i32, i32
  }
  func.func @transform_5(%arg0: i32, %arg1: i32) -> (i32, i32) {
    %c0_i32 = arith.constant 0 : i32
    %c0_i32_0 = arith.constant 0 : i32
    return %arg0, %c0_i32 : i32, i32
  }
  func.func @transform_6(%arg0: i32, %arg1: i32) -> (i32, i32) {
    %c0_i32 = arith.constant 0 : i32
    %c0_i32_0 = arith.constant 0 : i32
    return %arg0, %c0_i32 : i32, i32
  }
  func.func @transform_7(%arg0: i32, %arg1: i32) -> (i32, i32) {
    %c0_i32 = arith.constant 0 : i32
    %c0_i32_0 = arith.constant 0 : i32
    %c0_i32_1 = arith.constant 0 : i32
    return %c0_i32, %c0_i32_0 : i32, i32
  }
  func.func @transform_8(%arg0: i32, %arg1: i32) -> (i32, i32) {
    %c0_i32 = arith.constant 0 : i32
    %c0_i32_0 = arith.constant 0 : i32
    %c0_i32_1 = arith.constant 0 : i32
    return %c0_i32, %c0_i32_0 : i32, i32
  }
  func.func @transform_9(%arg0: i32, %arg1: i32) -> (i32, i32) {
    %c0_i32 = arith.constant 0 : i32
    %c0_i32_0 = arith.constant 0 : i32
    %c0_i32_1 = arith.constant 0 : i32
    return %c0_i32, %c0_i32_0 : i32, i32
  }
  func.func @transform_10(%arg0: i32, %arg1: i32) -> (i32, i32) {
    %c0_i32 = arith.constant 0 : i32
    %c0_i32_0 = arith.constant 0 : i32
    %c0_i32_1 = arith.constant 0 : i32
    return %c0_i32, %c0_i32_0 : i32, i32
  }
  func.func @transform_11(%arg0: i32, %arg1: i32) -> (i32, i32, i32) {
    %c0_i32 = arith.constant 0 : i32
    %c0_i32_0 = arith.constant 0 : i32
    return %arg1, %arg0, %c0_i32 : i32, i32, i32
  }
}

</mosaic_0001>

<bundles_post_ra>
// kernel: tpu_custom_call.1
= control target key start
LH: loop header
LB: loop body
LE: loop exit
PB: predicated region body
PF: predicated region fallthrough
CT: control target
= control target key end

     0   :  { %s3657_s0 = inlined_call_operand.hbm [shape: bf16[5,2,128], index: 0, kind: input, shape index: {}]   ;;  %s3658_s1 = inlined_call_operand.hbm [shape: bf16[2,8,128], index: 1, kind: input, shape index: {}]   ;;  %s3659_s2 = inlined_call_operand.hbm [shape: bf16[2,128,128], index: 2, kind: input, shape index: {}]   ;;  %s3660_s3 = inlined_call_operand.vmem [shape: f32[2,8], index: 3, kind: input, shape index: {}]   ;;  %s3661_s4 = inlined_call_operand.vmem [shape: f32[2,128], index: 4, kind: input, shape index: {}]   ;;  %s3662_s5 = inlined_call_operand.vmem [shape: f32[2,128], index: 5, kind: input, shape index: {}]   ;;  %s3663_s6 = inlined_call_operand.vmem [shape: f32[2,128], index: 6, kind: input, shape index: {}]   ;;  %s3664_s7 = inlined_call_operand.hbm [shape: bf16[512,128], index: 7, kind: input, shape index: {}]   ;;  %s3665_s8 = inlined_call_operand.vmem [shape: f32[1,128], index: 8, kind: input, shape index: {}]   ;;  %s3666_s9 = inlined_call_operand.hbm [shape: bf16[128,128], index: 9, kind: input, shape index: {}]   ;;  %s3667_s10 = inlined_call_operand.vmem [shape: f32[1,128], index: 10, kind: input, shape index: {}]   ;;  %s3668_s11 = inlined_call_operand.hbm [shape: f32[5,2,128], index: 11, kind: output, shape index: {}]  }
   0x1   :  { %3675 = sst [smem:[#allocation18_spill]] %s3660_s3 }
   0x2   :  { %3676 = sst [smem:[#allocation19_spill]] %s3661_s4 }
   0x3   :  { %3677 = sst [smem:[#allocation20_spill]] %s3665_s8 }
   0x4   :  { %3678 = sst [smem:[#allocation21_spill]] %s3667_s10 }
   0x5   :  { %3679 = sst [smem:[#allocation22_spill]] %s3668_s11 }
   0x6   :  { %16 = vsyncpa [#allocation5], 0 }
   0x7   :  { %18 = vsyncpa [#allocation5 + $0x1], 0 }
   0x8   :  { %19 = vsyncpa [#allocation8], 0 }
   0x9   :  { %20 = vsyncpa [#allocation11], 0 }
   0xa   :  { %21 = vsyncpa [#allocation6], 0 }
   0xb   :  { %23 = vsyncpa [#allocation6 + $0x1], 0  ;;  %s2929_s17 = smov 0   ;;  %s2931_s18 = smov 0  }
   0xc   :  { %s2933_s19 = smov 0   ;;  %s2935_s20 = smov 0  }
   0xd   :  { %s2937_s21 = smov 0   ;;  %s2939_s22 = smov 0  }
   0xe LB: > { %s3669_s23 = sadd.s32 4294967295, %s2855_s22   ;;  %p2180_p0 = scmp.ge.s32.totalorder %s2855_s22, 1  ;;  %s2855_s22 = sphi %s2939_s22, %s29_s22   ;;  %s2851_s21 = sphi %s2937_s21, %s3704_s21   ;;  %s2847_s20 = sphi %s2935_s20, %s3703_s20   ;;  %s2843_s19 = sphi %s2933_s19, %s3702_s19   ;;  %s2839_s18 = sphi %s2931_s18, %s3701_s18   ;;  %s2835_s17 = sphi %s2929_s17, %s3700_s17  }
   0xf   : > { %p2963_p1 = scmp.eq.s32.totalorder %s3669_s23, 0  ;;  %p342_p2 = scmp.lt.s32.totalorder %s2855_s22, 6 }
  0x10   : > { %s2857_s26 = smov [#allocation7]   ;;  %s2858_s29 = smov [#allocation10]  }
  0x11   : > { %s3680_s24 = scalar_select %p2963_p1, 1, 0 }
  0x12   : > { %p2968_p3 = pnand %p2180_p0, %p342_p2  ;;  %s357_s27 = sshll.u32 %s2857_s26, 4  ;;  %s2972_s27 = int_to_ptr.vmem [resolvable:$true] %s357_s27 }
  0x13   : > { %s415_s30 = sshll.u32 %s2858_s29, 4  ;;  %s2859_s12 = smov [#allocation9]   ;;  %s2982_s30 = int_to_ptr.vmem [resolvable:$true] %s415_s30 }
  0x14   : > { %s3681_s25 = scalar_select %p2968_p3, 1, 0 }
  0x15   : > { %p2420_p4 = pneg %p2968_p3  ;;  %s2984_s13 = sshll.u32 %s2859_s12, 4  ;;  %s375_s13 = int_to_ptr.vmem [resolvable:$true] %s2984_s13 }
  0x16   : > { %s2623_s16 = scalar_lea.hbm %s3658_s1, 128 }
  0x17   : > { %p2978_p5 = pnand %p2420_p4, %p2963_p1  ;;  %p2624_p6 = scmp.ne.s32.totalorder %s3658_s1, %s2623_s16 }
  0x18   : > { %p2630_p10 = scmp.lt.u32.totalorder %s2623_s16, %s3658_s1 }
  0x19   : > { %p2994_p7 = pneg %p2978_p5 }
  0x1b   : > { %p2626_p8 = pnand %p2994_p7, %p2624_p6 }
  0x1d   : > { %p2627_p9 = pneg %p2626_p8 }
  0x1f   : > { %p2632_p11 = pnand %p2630_p10, %p2627_p9 }
  0x21   : > { %2635 = shalt.err (!%p2632_p11)
}
  0x22   : > { %s2636_s23 = scalar_lea.vmem %s2972_s27, 128  ;;  %p2644_p2 = scmp.lt.s32.totalorder %s2972_s27, %s2972_s27 }
  0x23   : > { %p2637_p12 = scmp.ne.s32.totalorder %s2972_s27, %s2636_s23  ;;  %p2645_p4 = scmp.lt.s32.totalorder %s2636_s23, %s2636_s23 }
  0x25   : > { %p2639_p13 = pnand %p2637_p12, %p2994_p7  ;;  %p2646_p6 = por %p2645_p4, %p2644_p2 }
  0x27   : > { %p2640_p0 = pneg %p2639_p13 }
  0x29   : > { %p2647_p8 = pnand %p2646_p6, %p2640_p0 }
  0x2b   : > { %2650 = shalt.err (!%p2647_p8)
}
  0x2c   : > { %s2860_s14 = smov 64   ;;  %s2861_s15 = smov 4  }
  0x2d   : > { %2423 = dma.hbm_to_vmem [thread:$0]  (!%p2978_p5), %s3658_s1, 128, %s2972_s27, [#allocation8], %s2860_s14, %s2860_s14, %s2861_s15  }
  0x2e   : > { %s2651_s23 = scalar_lea.hbm %s3664_s7, 4096 }
  0x2f   : > { %p2652_p9 = scmp.ne.s32.totalorder %s3664_s7, %s2651_s23  ;;  %p2658_p12 = scmp.lt.u32.totalorder %s2651_s23, %s3664_s7 }
  0x31   : > { %p2654_p10 = pnand %p2652_p9, %p2994_p7 }
  0x33   : > { %p2655_p11 = pneg %p2654_p10 }
  0x35   : > { %p2660_p13 = pnand %p2658_p12, %p2655_p11 }
  0x37   : > { %2663 = shalt.err (!%p2660_p13)
}
  0x38   : > { %s2664_s27 = scalar_lea.vmem %s2982_s30, 4096  ;;  %p2672_p6 = scmp.lt.s32.totalorder %s2982_s30, %s2982_s30 }
  0x39   : > { %p2665_p0 = scmp.ne.s32.totalorder %s2982_s30, %s2664_s27  ;;  %p2673_p8 = scmp.lt.s32.totalorder %s2664_s27, %s2664_s27 }
  0x3b   : > { %p2667_p2 = pnand %p2665_p0, %p2994_p7  ;;  %p2674_p9 = por %p2673_p8, %p2672_p6 }
  0x3d   : > { %p2668_p4 = pneg %p2667_p2 }
  0x3f   : > { %p2675_p10 = pnand %p2674_p9, %p2668_p4 }
  0x41   : > { %2678 = shalt.err (!%p2675_p10)
}
  0x42   : > { %2429 = dma.hbm_to_vmem [thread:$0]  (!%p2978_p5), %s3664_s7, 4096, %s2982_s30, [#allocation11], %s2860_s14, %s2860_s14, %s2861_s15  }
  0x43   : > { %s2679_s16 = scalar_lea.hbm %s3659_s2, 2048 }
  0x44   : > { %p2680_p11 = scmp.ne.s32.totalorder %s3659_s2, %s2679_s16  ;;  %p2686_p0 = scmp.lt.u32.totalorder %s2679_s16, %s3659_s2 }
  0x46   : > { %p2682_p12 = pnand %p2680_p11, %p2994_p7 }
  0x48   : > { %p2683_p13 = pneg %p2682_p12 }
  0x4a   : > { %p2688_p2 = pnand %p2686_p0, %p2683_p13 }
  0x4c   : > { %2691 = shalt.err (!%p2688_p2)
}
  0x4d   : > { %s2692_s27 = scalar_lea.vmem %s375_s13, 2048  ;;  %p2700_p9 = scmp.lt.s32.totalorder %s375_s13, %s375_s13 }
  0x4e   : > { %p2693_p4 = scmp.ne.s32.totalorder %s375_s13, %s2692_s27  ;;  %p2701_p10 = scmp.lt.s32.totalorder %s2692_s27, %s2692_s27 }
  0x50   : > { %p2695_p6 = pnand %p2693_p4, %p2994_p7  ;;  %p2702_p3 = por %p2701_p10, %p2700_p9 }
  0x52   : > { %p2696_p8 = pneg %p2695_p6 }
  0x54   : > { %p2703_p1 = pnand %p2702_p3, %p2696_p8 }
  0x56   : > { %2706 = shalt.err (!%p2703_p1)
}
  0x57   : > { %2426 = dma.hbm_to_vmem [thread:$0]  (!%p2978_p5), %s3659_s2, 2048, %s375_s13, [#allocation8], %s2860_s14, %s2860_s14, %s2861_s15  }
  0x58   : > { %s2862_s4 = smov [#allocation12]   ;;  %s2707_s26 = scalar_lea.hbm %s3666_s9, 1024 }
  0x59   : > { %s431_s8 = sshll.u32 %s2862_s4, 4  ;;  %p2708_p1 = scmp.ne.s32.totalorder %s3666_s9, %s2707_s26  ;;  %s432_s8 = int_to_ptr.vmem [resolvable:$true] %s431_s8 }
  0x5a   : > { %p2714_p12 = scmp.lt.u32.totalorder %s2707_s26, %s3666_s9 }
  0x5b   : > { %p2710_p3 = pnand %p2708_p1, %p2994_p7 }
  0x5d   : > { %p2711_p11 = pneg %p2710_p3 }
  0x5f   : > { %p2716_p13 = pnand %p2714_p12, %p2711_p11 }
  0x61   : > { %2719 = shalt.err (!%p2716_p13)
}
  0x62   : > { %s2720_s13 = scalar_lea.vmem %s432_s8, 1024  ;;  %p2728_p6 = scmp.lt.s32.totalorder %s432_s8, %s432_s8 }
  0x63   : > { %p2721_p0 = scmp.ne.s32.totalorder %s432_s8, %s2720_s13  ;;  %p2729_p8 = scmp.lt.s32.totalorder %s2720_s13, %s2720_s13 }
  0x65   : > { %p2723_p2 = pnand %p2721_p0, %p2994_p7  ;;  %p2730_p9 = por %p2729_p8, %p2728_p6 }
  0x67   : > { %p2724_p4 = pneg %p2723_p2 }
  0x69   : > { %p2731_p10 = pnand %p2730_p9, %p2724_p4 }
  0x6b   : > { %2734 = shalt.err (!%p2731_p10)
}
  0x6c   : > { %2432 = dma.hbm_to_vmem [thread:$0]  (!%p2978_p5), %s3666_s9, 1024, %s432_s8, [#allocation11], %s2860_s14, %s2860_s14, %s2861_s15  }
  0x6d   : > { %s2179_s11 = sadd.s32 4294967294, %s2855_s22   ;;  %s38_s28 = sadd.s32 1, %s2851_s21 }
  0x6e   : > { %p39_p7 = scmp.ge.s32.totalorder %s38_s28, 5  ;;  %s50_s4 = sadd.s32 1, %s2843_s19 }
  0x6f   : > { %p57_p1 = scmp.ne.s32.totalorder %s2843_s19, %s2839_s18  ;;  %p58_p3 = scmp.eq.s32.totalorder %s2855_s22, 0 }
  0x70   : > { %s3706_s28 = smov (%p39_p7, %s38_s28), 0  ;;  %p63_p12 = scmp.ne.s32.totalorder %s2839_s18, %s2835_s17 }
  0x71   : > { %p3095_p11 = por %p58_p3, %p57_p1  ;;  %s45_s14 = ssub.s32 %s2851_s21, %s3706_s28 }
  0x72   : > { %s3685_s15 = sadd.s32 4294967295, %s2855_s22   ;;  %p48_p13 = scmp.eq.s32.totalorder %s45_s14, 0 }
  0x73   : > { %p329_p5 = scmp.eq.s32.totalorder %s3685_s15, 4  ;;  %p3686_p0 = scmp.ne.s32.totalorder %s3680_s24, 0 }
  0x74   : > { %p335_p6 = scmp.eq.s32.totalorder %s2179_s11, 4  ;;  %p2445_p9 = scmp.lt.s32.totalorder %s2855_s22, 5 }
  0x75   : > { %p3107_p2 = por %p3686_p0, %p63_p12  ;;  %p3111_p4 = por %p329_p5, %p57_p1 }
  0x76   : > { %s3116_s26 = scalar_select %p48_p13, %s2843_s19, %s50_s4  }
  0x77   : > { %s3688_s16 = scalar_select %p3111_p4, 1, 0 }
  0x78   : > { %p3118_p8 = por %p335_p6, %p63_p12  ;;  %s448_s12 = sand.u32 1, %s2843_s19  }
  0x79   : > { %s2190_s23 = sshll.u32 %s2851_s21, 4  ;;  %s451_s3 = scalar_lea.vmem [#allocation4], %s448_s12 }
  0x7a   : > { %s3689_s29 = scalar_select %p3118_p8, 1, 0 }
  0x7b   : > { %s3128_s30 = scalar_lea.hbm %s3657_s0, %s2190_s23  ;;  %s459_s11 = sshll.u32 %s451_s3, 4  ;;  %s3130_s11 = int_to_ptr.vmem [resolvable:$true] %s459_s11 }
  0x7c   : > { %p3134_p10 = pnand %p2445_p9, %p3095_p11  ;;  %s449_s14 = scalar_lea.sflag [#allocation5], %s448_s12 }
  0x7d   : > { %s2735_s15 = scalar_lea.hbm %s3128_s30, 16  ;;  %s2740_s13 = scalar_lea.hbm %s3657_s0, 80 }
  0x7e   : > { %p2736_p7 = scmp.ne.s32.totalorder %s3128_s30, %s2735_s15  ;;  %p2737_p1 = pneg %p3134_p10 }
  0x7f   : > { %p2741_p11 = scmp.lt.u32.totalorder %s3128_s30, %s3657_s0  ;;  %p2742_p5 = scmp.lt.u32.totalorder %s2740_s13, %s2735_s15 }
  0x80   : > { %p2738_p3 = pnand %p2737_p1, %p2736_p7  ;;  %p2744_p0 = scmp.lt.u32.totalorder %s2735_s15, %s3128_s30 }
  0x81   : > { %p2743_p13 = por %p2742_p5, %p2741_p11 }
  0x82   : > { %p2739_p12 = pneg %p2738_p3 }
  0x83   : > { %p2745_p6 = por %p2744_p0, %p2743_p13 }
  0x85   : > { %p2746_p9 = pnand %p2745_p6, %p2739_p12 }
  0x87   : > { %2749 = shalt.err (!%p2746_p9)
}
  0x88   : > { %s2750_s12 = scalar_lea.vmem %s3130_s11, 16  ;;  %s2863_s23 = smov [#allocation4]  }
  0x89   : > { %p2751_p7 = scmp.ne.s32.totalorder %s3130_s11, %s2750_s12  ;;  %s2755_s27 = sshll.u32 %s2863_s23, 4  ;;  %s2756_s27 = int_to_ptr.vmem [resolvable:$false] %s2755_s27 }
  0x8a   : > { %s2757_s10 = scalar_lea.vmem %s2756_s27, 32  ;;  %p2758_p4 = scmp.lt.s32.totalorder %s3130_s11, %s2756_s27 }
  0x8b   : > { %p2753_p3 = pnand %p2751_p7, %p2737_p1  ;;  %p2759_p11 = scmp.lt.s32.totalorder %s2757_s10, %s2750_s12 }
  0x8d   : > { %p2754_p8 = pneg %p2753_p3  ;;  %p2760_p5 = por %p2759_p11, %p2758_p4 }
  0x8f   : > { %p2761_p13 = pnand %p2760_p5, %p2754_p8 }
  0x91   : > { %2764 = shalt.err (!%p2761_p13)
}
  0x92   : > { %2436 = dma.hbm_to_vmem [thread:$0]  (!%p3134_p10), %s3128_s30, 16, %s3130_s11, %s449_s14  }
  0x93   : > { %p3691_p12 = scmp.ne.s32.totalorder %s3681_s25, 0 }
  0x94   : > { %s3166_s15 = sand.u32 (!%p3691_p12), 1, %s2839_s18  }
  0x95   : > { %468 = sbr.rel (%p3691_p12) target bundleno = 1903 (0x76f), region = 64  ;;  %s471_s13 = scalar_lea.sflag (!%p3691_p12), [#allocation5], %s3166_s15 }
  0x96   : > { %s473_s3 = scalar_lea.vmem (!%p3691_p12), [#allocation4], %s3166_s15 }
  0x9c   : > { %2818 = dma.done.wait (%p3107_p2), %s471_s13, 16  }
  0x9d   : > { %2820 = vsyncadd (%p3107_p2), %s471_s13, 4294967280  ;;  %p3692_p4 = scmp.ne.s32.totalorder %s3680_s24, 0 }
  0x9f   : > { %2822 = dma.done.wait (%p3692_p4), [#allocation8], 2176  }
  0xa0   : > { %2824 = vsyncadd (%p3692_p4), [#allocation8], 4294965120 }
  0xa1   : > { %2826 = dma.done.wait (%p3692_p4), [#allocation11], 5120  }
  0xa2   : > { %2828 = vsyncadd (%p3692_p4), [#allocation11], 4294962176  ;;  %s2196_s25 = sshll.u32 %s3166_s15, 1  ;;  %p2197_p8 = scmp.ne.s32.totalorder %s2847_s20, 0 }
  0xa3   : > { %s3183_s30 = scalar_lea.vmem [#allocation13], %s2196_s25  ;;  %v566_v0 = vld [vmem:[%s3662_s5] sm:$0x3] (!%p2197_p8) }
  0xa4   : > { %565 = sbr.rel (%p2197_p8) target bundleno = 171 (0xab), region = 88  ;;  %v568_v1 = vld [vmem:[%s3663_s6] sm:$0x3] (!%p2197_p8)  ;;  %567 = vst [vmem:[#allocation2] sm:$0x3] (!%p2197_p8), %v566_v0 }
  0xa5   : > { %569 = vst [vmem:[#allocation3] sm:$0x3] (!%p2197_p8), %v568_v1 }
  0xab PF: > { %v581_v2 = vlaneseq  ;;  %v2864_v3 = vmov 1966171168   ;;  %s3693_s23 = sld [smem:[#allocation18_spill]]  ;;  %v3195_v6 = vld [vmem:[#allocation2] sm:$0x3]  ;;  %v3199_v9 = vld [vmem:[#allocation7] sm:$0xff]  }
  0xac   : > { %v579_v4 = vunpack.c.l.s4 %v2864_v3  ;;  %v2246_v16 = vunpack.c.l.bf16 %v3199_v9  ;;  %v2247_v20 = vunpack.c.h.bf16 %v3199_v9  ;;  %v2865_v25 = vmov 0   ;;  %s3694_s13 = sld [smem:[#allocation19_spill]]  ;;  %v2511_v59 = vld [vmem:[#allocation10 + $0x40] sm:$0xff]   ;;  %v2513_v61 = vld [vmem:[#allocation10 + $0x48] sm:$0xff]   ;;  %s3695_s8 = sld [smem:[#allocation20_spill]] }
  0xad   : > { %v3197_v7 = vshrl.u32 %v581_v2, 7  ;;  %2509 = vset.pattern.permute.xlu0 %v2865_v25  ;;  %2510 = vset.pattern.permute.xlu1 %v2865_v25  ;;  %v3224_v34 = vand.u32 127, %v581_v2  ;;  %vm656_vm0 = vcmask 1041409   ;;  %vm659_vm1 = vcmask 58368   ;;  %v2512_v60 = vld [vmem:[#allocation10] sm:$0xff]   ;;  %v2519_v0 = vld [vmem:[#allocation10 + $0xc8] sm:$0xff]  }
  0xae   : > { %v580_v8 = vunpack.c.0.s8 %v579_v4  ;;  %v2515_v62 = vld [vmem:[#allocation10 + $0xc0] sm:$0xff]   ;;  %2327 = vmatprep.subr.bf16.mxu0 %v2511_v59  ;;  %v2514_v1 = vld [vmem:[#allocation10 + $0x8] sm:$0xff]   ;;  %v2517_v2 = vld [vmem:[#allocation10 + $0x50] sm:$0xff]   ;;  %vm2867_vm2 = vmmov 0   ;;  %s3696_s14 = sld [smem:[#allocation21_spill]]  ;;  %vm1802_vm3 = vcmask 130112  }
  0xaf   : > { %v3202_v10 = vsub.s32 0, %v3197_v7  ;;  %v3205_v11 = vsub.s32 1, %v3197_v7  ;;  %v3228_v35 = vsub.s32 %v3224_v34, %v3197_v7  ;;  %v2516_v63 = vld [vmem:[#allocation10 + $0x80] sm:$0xff]   ;;  %2328 = vmatpush3.bf16.msra.mxu0 %v2512_v60  ;;  %2349 = vmatprep.subr.bf16.mxu1 %v2515_v62  ;;  %v2520_v3 = vld [vmem:[#allocation10 + $0x88] sm:$0xff]   ;;  %v2518_v4 = vld [vmem:[#allocation10 + $0x10] sm:$0xff]   ;;  %vm1809_vm4 = vcmask 195712  }
  0xb0   : > { %v3208_v12 = vsub.s32 %v580_v8, %v3197_v7  ;;  %2329 = vmatprep.subr.bf16.mxu0 %v2513_v61  ;;  %2350 = vmatpush3.bf16.msra.mxu1 %v2516_v63  ;;  %v2526_v25 = vld [vmem:[#allocation10 + $0x20] sm:$0xff]   ;;  %vm1816_vm5 = vcmask 261312   ;;  %vm1823_vm6 = vcmask 326912   ;;  %vm1830_vm7 = vcmask 392512   ;;  %s2241_s24 = sshll.u32 %s2847_s20, 5  ;;  %s1999_s12 = sshll.u32 %s3183_s30, 4  ;;  %s3609_s12 = int_to_ptr.vmem [resolvable:$true] %s1999_s12 }
  0xb1   : > { %v618_v5 = vld [vmem:[%s3693_s23] sm:$0x3]  ;;  %2351 = vmatprep.subr.bf16.mxu1 %v2519_v0  ;;  %vm1837_vm8 = vcmask 458112   ;;  %vm1844_vm9 = vcmask 523712   ;;  %vm1851_vm10 = vcmask 589312   ;;  %vm1858_vm11 = vcmask 654912  }
  0xb2   : > { %v623_v13 = vrot.slane %v618_v5, %v3202_v10  ;;  %v584_v14 = vrot.slane %v3195_v6, %v3208_v12  ;;  %v630_v15 = vrot.slane %v618_v5, %v3205_v11  ;;  %v1465_v57 = vld [vmem:[%s3694_s13] sm:$0x3]  ;;  %vm1865_vm12 = vcmask 720512   ;;  %s3697_s10 = sld [smem:[#allocation22_spill]]  ;;  %s1985_s20 = scalar_lea.sflag [#allocation6], %s3166_s15 }
  0xb3   : > { %v3247_v58 = vrot.slane %v1465_v57, %v3202_v10  ;;  %2330 = vmatpush3.bf16.msra.mxu0 %v2514_v1  ;;  %v3258_v5 = vrot.slane %v1465_v57, %v3205_v11  ;;  %vm1872_vm13 = vcmask 786112   ;;  %vm1879_vm14 = vcmask 851712   ;;  %p3698_p10 = scmp.ne.s32.totalorder %s3688_s16, 0  ;;  %s2868_s25 = smov [#allocation13]  }
  0xb4   : > { %625 = vbcast.lane.b32.xlu1 %v623_v13, 256  ;;  %v592_v17 = vrot.slane %v584_v14, %v3208_v12  ;;  %v585_v18 = vcombine.high %v584_v14, %v584_v14  ;;  %2331 = vmatprep.subr.bf16.mxu0 %v2517_v2  ;;  %vm1886_vm15 = vcmask 917312  }
  0xb5   : > { %2352 = vmatpush3.bf16.msra.mxu1 %v2520_v3 }
  0xb6   : > { %v603_v19 = vrot.slane %v592_v17, %v3202_v10  ;;  %v599_v21 = vrot.slane %v585_v18, %v3208_v12  ;;  %v2521_v18 = vld [vmem:[#allocation10 + $0x58] sm:$0xff]  }
  0xb7   : > { %2332 = vmatpush3.bf16.msra.mxu0 %v2518_v4 }
  0xb8   : > { %632 = vbcast.lane.b32.xlu1 %v630_v15, 256  ;;  %v610_v22 = vmul.f32 %v2246_v16, %v603_v19  ;;  %v607_v23 = vrot.slane %v599_v21, %v3202_v10  ;;  %v2522_v19 = vld [vmem:[#allocation10 + $0x18] sm:$0xff]   ;;  %v2523_v21 = vld [vmem:[#allocation10 + $0xd0] sm:$0xff]   ;;  %2333 = vmatprep.subr.bf16.mxu0 %v2521_v18  ;;  %v2547_v18 = vld [vmem:[#allocation12 + $0x20] sm:$0xff]   ;;  %s3607_s13 = scalar_lea.hbm %s3697_s10, %s2241_s24 }
  0xb9   : > { %2353 = vmatprep.subr.bf16.mxu1 %v2523_v21  ;;  %v2549_v21 = vld [vmem:[#allocation12 + $0x30] sm:$0xff]  }
  0xba   : > { %612 = vadd.xlane.f32.xlu0 %v610_v22  ;;  %v611_v24 = vmul.f32 %v2247_v20, %v607_v23  ;;  %v2524_v22 = vld [vmem:[#allocation10 + $0x90] sm:$0xff]  }
  0xbb   : > { %2334 = vmatpush3.bf16.msra.mxu0 %v2522_v19  ;;  %2354 = vmatpush3.bf16.msra.mxu1 %v2524_v22  ;;  %v2548_v19 = vld [vmem:[#allocation12 + $0x28] sm:$0xff]   ;;  %v2550_v22 = vld [vmem:[#allocation12 + $0x38] sm:$0xff]  }
  0xbe   : > { %614 = vadd.xlane.f32.xlu0 %v611_v24  ;;  %v2525_v24 = vld [vmem:[#allocation10 + $0x60] sm:$0xff]  }
  0xbf   : > { %2335 = vmatprep.subr.bf16.mxu0 %v2525_v24 }
  0xc0   : > { %2336 = vmatpush3.bf16.msra.mxu0 %v2526_v25 }
 0x126   : > { %v626_v26 = vpop.permute.xlu1 %625 }
 0x12a   : > { %v633_v31 = vpop.permute.xlu1 %632 }
 0x147   : > { %v613_v27 = vpop.xlane.xlu0 %612 }
 0x148   : > { %v616_v28 = vmul.f32 0.17677669, %v613_v27  ;;  %v2528_v27 = vld [vmem:[#allocation10 + $0x98] sm:$0xff]  }
 0x14a   : > { %v636_v29 = vadd.f32 %v626_v26, %v616_v28  ;;  %v2527_v26 = vld [vmem:[#allocation10 + $0xd8] sm:$0xff]   ;;  %v2530_v28 = vld [vmem:[#allocation10 + $0x28] sm:$0xff]  }
 0x14b   : > { %v615_v30 = vpop.xlane.xlu0 %614  ;;  %2355 = vmatprep.subr.bf16.mxu1 %v2527_v26 }
 0x14c   : > { %v617_v32 = vmul.f32 0.17677669, %v615_v30  ;;  %641 = vperm.xlu0 %2509, %v636_v29   ;;  %2356 = vmatpush3.bf16.msra.mxu1 %v2528_v27  ;;  %v2532_v30 = vld [vmem:[#allocation10 + $0xa0] sm:$0xff]  }
 0x14e   : > { %v637_v33 = vadd.f32 %v633_v31, %v617_v32  ;;  %v2533_v31 = vld [vmem:[#allocation10 + $0x70] sm:$0xff]  }
 0x14f   : > { %v2534_v32 = vld [vmem:[#allocation10 + $0x30] sm:$0xff]  }
 0x150   : > { %644 = vperm.xlu1 %2510, %v637_v33  }
 0x1cb   : > { %v642_v36 = vpop.permute.xlu0 %641 }
 0x1cc   : > { %v651_v38 = vrot.slane %v642_v36, %v3228_v35  ;;  %v2536_v36 = vld [vmem:[#allocation10 + $0xa8] sm:$0xff]  }
 0x1cf   : > { %v645_v37 = vpop.permute.xlu1 %644 }
 0x1d0   : > { %v655_v39 = vrot.slane %v645_v37, %v3228_v35  ;;  %v2537_v37 = vld [vmem:[#allocation10 + $0x78] sm:$0xff]  }
 0x1d2   : > { %v657_v40 = vsel %vm656_vm0, %v655_v39, %v651_v38  ;;  %v2538_v38 = vld [vmem:[#allocation10 + $0x38] sm:$0xff]   ;;  %v2539_v39 = vld [vmem:[#allocation10 + $0xf0] sm:$0xff]  }
 0x1d3   : > { %v660_v41 = vsel %vm659_vm1, %v657_v40, -inf  ;;  %v2540_v40 = vld [vmem:[#allocation10 + $0xb0] sm:$0xff]  }
 0x1d4   : > { %661 = vmax.xlane.f32.xlu1 %v660_v41  ;;  %v739_v41 = vpack.c.bf16 %v3195_v6, %v3195_v6  ;;  %v2544_v6 = vld [vmem:[#allocation12 + $0x8] sm:$0xff]  }
 0x1d6   : > { %1045 = vmatprep.mubr.bf16.mxu0 %v739_v41 }
 0x261   : > { %v662_v42 = vpop.xlane.xlu1 %661 }
 0x262   : > { %v667_v43 = vrot.slane %v662_v42, %v3202_v10  ;;  %v671_v44 = vrot.slane %v662_v42, %v3205_v11  ;;  %v570_v42 = vld [vmem:[%s473_s3] sm:$0x1]  ;;  %s2765_s3 = scalar_lea.vmem %s3609_s12, 32 }
 0x263   : > { %p2766_p2 = scmp.ne.s32.totalorder %s3609_s12, %s2765_s3 }
 0x264   : > { %v674_v45 = vsub.f32 %v636_v29, %v667_v43  ;;  %v675_v46 = vsub.f32 %v637_v33, %v671_v44  ;;  %v2531_v29 = vld [vmem:[#allocation10 + $0xe0] sm:$0xff]   ;;  %v2535_v33 = vld [vmem:[#allocation10 + $0xe8] sm:$0xff]   ;;  %v2541_v43 = vld [vmem:[#allocation10 + $0xf8] sm:$0xff]  }
 0x265   : > { %2357 = vmatprep.subr.bf16.mxu1 %v2531_v29  ;;  %v2542_v44 = vld [vmem:[#allocation10 + $0xb8] sm:$0xff]   ;;  %p2767_p1 = pnand %p2766_p2, %p3698_p10 }
 0x266   : > { %v676_v47 = vmul.f32 1.442695, %v674_v45  ;;  %v678_v48 = vmul.f32 1.442695, %v675_v46  ;;  %2358 = vmatpush3.bf16.msra.mxu1 %v2532_v30  ;;  %v572_v45 = vld [vmem:[#allocation3] sm:$0x3] }
 0x267   : > { %2359 = vmatprep.subr.bf16.mxu1 %v2535_v33  ;;  %v742_v46 = vpack.c.bf16 %v572_v45, %v572_v45  ;;  %v2249_v33 = vld [vmem:[#allocation9] sm:$0xff]   ;;  %p2768_p0 = pneg %p2767_p1 }
 0x268   : > { %2551 = vpow2.f32 %v676_v47  ;;  %v2543_v47 = vld [vmem:[#allocation12] sm:$0xff]  }
 0x269   : > { %2553 = vpow2.f32 %v678_v48  ;;  %1085 = vmatprep.mubr.bf16.mxu1 %v742_v46  ;;  %v2866_v48 = vmov 0.0  }
 0x26a   : > { %2360 = vmatpush3.bf16.msra.mxu1 %v2536_v36  ;;  %v2312_v36 = vld [vmem:[#allocation9 + $0x8] sm:$0xff]  }
 0x26b   : > { %2361 = vmatprep.subr.bf16.mxu1 %v2539_v39  ;;  %v2314_v39 = vld [vmem:[#allocation9 + $0x18] sm:$0xff]   ;;  %v2254_v45 = vunpack.c.l.bf16 %v2312_v36 }
 0x26c   : > { %v2263_v46 = vunpack.c.h.bf16 %v2314_v39 }
 0x26e   : > { %2362 = vmatpush3.bf16.msra.mxu1 %v2540_v40 }
 0x26f   : > { %2363 = vmatprep.subr.bf16.mxu1 %v2541_v43  ;;  %v2251_v43 = vunpack.c.h.bf16 %v2249_v33 }
 0x272   : > { %v2552_v49 = vpop.eup %2551  ;;  %2364 = vmatpush3.bf16.msra.mxu1 %v2542_v44  ;;  %v2250_v44 = vunpack.c.l.bf16 %v2249_v33 }
 0x273   : > { %v3236_v50 = vpop.eup %2553  ;;  %683 = vperm.xlu1 %2510, %v2552_v49  }
 0x274   : > { %686 = vperm.xlu0 %2509, %v3236_v50  }
 0x2f2   : > { %v684_v51 = vpop.permute.xlu1 %683 }
 0x2f3   : > { %v687_v52 = vpop.permute.xlu0 %686  ;;  %v691_v53 = vrot.slane %v684_v51, %v3228_v35 }
 0x2f4   : > { %v695_v54 = vrot.slane %v687_v52, %v3228_v35 }
 0x2f6   : > { %v696_v55 = vsel %vm656_vm0, %v695_v54, %v691_v53 }
 0x2f7   : > { %v698_v56 = vsel %vm659_vm1, %v696_v55, 0.0  ;;  %vm1893_vm1 = vcmask 982912  }
 0x2f8   : > { %699 = vadd.xlane.f32.xlu0 %v698_v56 }
 0x30e   : > { %1472 = vbcast.lane.b32.xlu0 %v3247_v58, 256 }
 0x312   : > { %1484 = vbcast.lane.b32.xlu0 %v3247_v58, 280 }
 0x316   : > { %1492 = vbcast.lane.b32.xlu0 %v3247_v58, 296 }
 0x31a   : > { %1500 = vbcast.lane.b32.xlu0 %v3247_v58, 312 }
 0x31e   : > { %1508 = vbcast.lane.b32.xlu0 %v3247_v58, 328 }
 0x322   : > { %1516 = vbcast.lane.b32.xlu0 %v3247_v58, 344 }
 0x326   : > { %1524 = vbcast.lane.b32.xlu0 %v3247_v58, 360 }
 0x32a   : > { %1532 = vbcast.lane.b32.xlu0 %v3247_v58, 376 }
 0x32e   : > { %1543 = vbcast.lane.b32.xlu0 %v3258_v5, 264 }
 0x332   : > { %1551 = vbcast.lane.b32.xlu0 %v3258_v5, 280 }
 0x336   : > { %1559 = vbcast.lane.b32.xlu0 %v3258_v5, 296 }
 0x33a   : > { %1567 = vbcast.lane.b32.xlu0 %v3258_v5, 312 }
 0x33e   : > { %1575 = vbcast.lane.b32.xlu0 %v3258_v5, 328 }
 0x342   : > { %1583 = vbcast.lane.b32.xlu0 %v3258_v5, 344 }
 0x346   : > { %1591 = vbcast.lane.b32.xlu0 %v3258_v5, 360 }
 0x34a   : > { %1599 = vbcast.lane.b32.xlu0 %v3258_v5, 376 }
 0x385   : > { %v700_v8 = vpop.xlane.xlu0 %699 }
 0x386   : > { %2555 = vrcp.f32 %v700_v8 }
 0x390   : > { %v2556_v13 = vpop.eup %2555 }
 0x391   : > { %v706_v14 = vrot.slane %v2556_v13, %v3202_v10  ;;  %v710_v17 = vrot.slane %v2556_v13, %v3205_v11  ;;  %v2529_v11 = vld [vmem:[#allocation10 + $0x68] sm:$0xff]  }
 0x392   : > { %2337 = vmatprep.subr.bf16.mxu0 %v2529_v11 }
 0x393   : > { %v713_v15 = vmul.f32 %v2552_v49, %v706_v14  ;;  %v714_v23 = vmul.f32 %v3236_v50, %v710_v17  ;;  %2338 = vmatpush3.bf16.msra.mxu0 %v2530_v28  ;;  %v2545_v49 = vld [vmem:[#allocation12 + $0x10] sm:$0xff]   ;;  %v2546_v17 = vld [vmem:[#allocation12 + $0x18] sm:$0xff]  }
 0x394   : > { %2339 = vmatprep.subr.bf16.mxu0 %v2533_v31 }
 0x395   : > { %717 = vperm.xlu1 %2510, %v713_v15  }
 0x397   : > { %2340 = vmatpush3.bf16.msra.mxu0 %v2534_v32 }
 0x398   : > { %2341 = vmatprep.subr.bf16.mxu0 %v2537_v37 }
 0x399   : > { %722 = vperm.xlu1 %2510, %v714_v23   ;;  %v2198_v23 = vld [vmem:[%s3695_s8] ss:$0 sm:$0xff]  ;;  %s2769_s8 = sshll.u32 %s2868_s25, 4  ;;  %s2770_s8 = int_to_ptr.vmem [resolvable:$false] %s2769_s8 }
 0x39a   : > { %s2771_s11 = scalar_lea.vmem %s2770_s8, 64  ;;  %p2772_p6 = scmp.lt.s32.totalorder %s3609_s12, %s2770_s8 }
 0x39b   : > { %2342 = vmatpush3.bf16.msra.mxu0 %v2538_v38  ;;  %p2773_p9 = scmp.lt.s32.totalorder %s2771_s11, %s2765_s3 }
 0x39c   : > { %2380 = vmatprep.subr.bf16.mxu0 %v2866_v48 }
 0x39d   : > { %1476 = vbcast.lane.b32.xlu1 %v3247_v58, 264  ;;  %p2774_p7 = por %p2773_p9, %p2772_p6 }
 0x39e   : > { %1046 = vmatmul.mubr.bf16.vlgmr.msra.gmra.mrb[0].mxu0 %v570_v42 }
 0x39f   : > { %2381 = vmatpush3.bf16.msra.mxu0 %v2543_v47  ;;  %2396 = vmatprep.mubr.msk.bf16.mxu0 %vm2867_vm2, %v2866_v48  ;;  %vm1900_vm2 = vcmask 1048512   ;;  %p2775_p3 = pnand %p2774_p7, %p2768_p0 }
 0x3a0   : > { %2382 = vmatprep.subr.bf16.mxu0 %v2866_v48 }
 0x3a1   : > { %1480 = vbcast.lane.b32.xlu1 %v3247_v58, 272 }
 0x3a3   : > { %2383 = vmatpush3.bf16.msra.mxu0 %v2544_v6 }
 0x3a4   : > { %2384 = vmatprep.subr.bf16.mxu0 %v2866_v48 }
 0x3a5   : > { %1488 = vbcast.lane.b32.xlu1 %v3247_v58, 288 }
 0x3a7   : > { %2385 = vmatpush3.bf16.msra.mxu0 %v2545_v49 }
 0x3a8   : > { %2386 = vmatprep.subr.bf16.mxu0 %v2866_v48 }
 0x3a9   : > { %1496 = vbcast.lane.b32.xlu1 %v3247_v58, 304 }
 0x3ab   : > { %2387 = vmatpush3.bf16.msra.mxu0 %v2546_v17 }
 0x3ac   : > { %2388 = vmatprep.subr.bf16.mxu0 %v2866_v48 }
 0x3ad   : > { %1504 = vbcast.lane.b32.xlu1 %v3247_v58, 320 }
 0x3af   : > { %2389 = vmatpush3.bf16.msra.mxu0 %v2547_v18 }
 0x3b0   : > { %2390 = vmatprep.subr.bf16.mxu0 %v2866_v48 }
 0x3b1   : > { %1512 = vbcast.lane.b32.xlu1 %v3247_v58, 336 }
 0x3b3   : > { %2391 = vmatpush3.bf16.msra.mxu0 %v2548_v19 }
 0x3b4   : > { %2392 = vmatprep.subr.bf16.mxu0 %v2866_v48 }
 0x3b5   : > { %1520 = vbcast.lane.b32.xlu1 %v3247_v58, 352 }
 0x3b7   : > { %2393 = vmatpush3.bf16.msra.mxu0 %v2549_v21 }
 0x3b8   : > { %2394 = vmatprep.subr.bf16.mxu0 %v2866_v48  ;;  %v2315_v48 = vld [vmem:[#allocation9 + $0x20] sm:$0xff]  }
 0x3b9   : > { %1528 = vbcast.lane.b32.xlu1 %v3247_v58, 368 }
 0x3bb   : > { %2395 = vmatpush3.bf16.msra.mxu0 %v2550_v22  ;;  %v2266_v22 = vunpack.c.l.bf16 %v2315_v48 }
 0x3bd   : > { %1539 = vbcast.lane.b32.xlu1 %v3258_v5, 256 }
 0x3c1   : > { %1547 = vbcast.lane.b32.xlu1 %v3258_v5, 272 }
 0x3c5   : > { %1555 = vbcast.lane.b32.xlu1 %v3258_v5, 288 }
 0x3c9   : > { %1563 = vbcast.lane.b32.xlu1 %v3258_v5, 304 }
 0x3cd   : > { %1571 = vbcast.lane.b32.xlu1 %v3258_v5, 320 }
 0x3d1   : > { %1579 = vbcast.lane.b32.xlu1 %v3258_v5, 336 }
 0x3d5   : > { %1587 = vbcast.lane.b32.xlu1 %v3258_v5, 352 }
 0x3d9   : > { %1595 = vbcast.lane.b32.xlu1 %v3258_v5, 368 }
 0x414   : > { %v718_v50 = vpop.permute.xlu1 %717 }
 0x415   : > { %v725_v51 = vmul.f32 %v2246_v16, %v718_v50 }
 0x417   : > { %v727_v52 = vrot.slane %v725_v51, 4 }
 0x418   : > { %v723_v53 = vpop.permute.xlu1 %722 }
 0x419   : > { %v728_v54 = vadd.f32 %v727_v52, %v725_v51  ;;  %v726_v55 = vmul.f32 %v2247_v20, %v723_v53  ;;  %v2255_v51 = vunpack.c.h.bf16 %v2312_v36  ;;  %v2267_v53 = vunpack.c.h.bf16 %v2315_v48  ;;  %v3359_v36 = vld [vmem:[#allocation9 + $0x70] sm:$0xff]  }
 0x41b   : > { %v729_v56 = vrot.slane %v728_v54, 2  ;;  %v733_v57 = vrot.slane %v726_v55, 4 }
 0x41d   : > { %v730_v58 = vadd.f32 %v729_v56, %v728_v54  ;;  %v734_v59 = vadd.f32 %v733_v57, %v726_v55  ;;  %v2313_v54 = vld [vmem:[#allocation9 + $0x10] sm:$0xff]   ;;  %v3317_v55 = vld [vmem:[#allocation9 + $0x28] sm:$0xff]  }
 0x41e   : > { %v2258_v57 = vunpack.c.l.bf16 %v2313_v54 }
 0x41f   : > { %v731_v60 = vrot.slane %v730_v58, 1  ;;  %v735_v61 = vrot.slane %v734_v59, 2 }
 0x421   : > { %v732_v62 = vadd.f32 %v731_v60, %v730_v58  ;;  %v736_v63 = vadd.f32 %v735_v61, %v734_v59  ;;  %v2271_v59 = vunpack.c.h.bf16 %v3317_v55  ;;  %v3322_v60 = vld [vmem:[#allocation9 + $0x30] sm:$0xff]  }
 0x423   : > { %v737_v0 = vrot.slane %v736_v63, 1  ;;  %v740_v1 = vpack.c.bf16 %v732_v62, %v732_v62  ;;  %v2259_v62 = vunpack.c.h.bf16 %v2313_v54 }
 0x425   : > { %v738_v2 = vadd.f32 %v737_v0, %v736_v63  ;;  %v745_v4 = vunpack.c.l.b16 %v740_v1  ;;  %v2275_v1 = vunpack.c.h.bf16 %v3322_v60 }
 0x427   : > { %v741_v3 = vpack.c.bf16 %v738_v2, %v738_v2  ;;  %v3327_v2 = vld [vmem:[#allocation9 + $0x38] sm:$0xff]  }
 0x428   : > { %v2278_v54 = vunpack.c.l.bf16 %v3327_v2 }
 0x429   : > { %v746_v16 = vunpack.c.l.b16 %v741_v3  ;;  %v3332_v3 = vld [vmem:[%s3696_s14] ss:$0 sm:$0xff] }
 0x42b   : > { %v747_v5 = vsel %vm656_vm0, %v746_v16, %v745_v4 }
 0x42c   : > { %v748_v8 = vpack.c.b16 %v747_v5, %v747_v5  ;;  %v2262_v5 = vunpack.c.l.bf16 %v2314_v39  ;;  %v2274_v39 = vunpack.c.l.bf16 %v3322_v60 }
 0x42e   : > { %1086 = vmatmul.mubr.bf16.vlgmr.msra.gmra.mrb[0].mxu1 %v748_v8  ;;  %v2279_v8 = vunpack.c.h.bf16 %v3327_v2 }
 0x471   : > { %v2343_v9 = vpop.f32.mrb[0].mxu0 }
 0x472   : > { %v2344_v20 = vpop.f32.mrb[1].mxu0 }
 0x473   : > { %v2345_v13 = vadd.f32 %v2344_v20, %v2343_v9  ;;  %v2346_v14 = vpop.f32.mrb[2].mxu0 }
 0x474   : > { %v2347_v15 = vpop.f32.mrb[3].mxu0 }
 0x475   : > { %v1048_v24 = vadd.f32 %v2345_v13, %v2198_v23  ;;  %v3339_v15 = vld [vmem:[#allocation9 + $0x40] sm:$0xff]  }
 0x476   : > { %v2283_v23 = vunpack.c.h.bf16 %v3339_v15 }
 0x501   : > { %v2365_v25 = vpop.f32.mrb[0].mxu1 }
 0x502   : > { %v2366_v26 = vpop.f32.mrb[1].mxu1 }
 0x503   : > { %v2367_v27 = vadd.f32 %v2366_v26, %v2365_v25  ;;  %v2368_v11 = vpop.f32.mrb[2].mxu1 }
 0x504   : > { %v2369_v28 = vpop.f32.mrb[3].mxu1  ;;  %v3350_v11 = vld [vmem:[#allocation9 + $0x48] sm:$0xff]  }
 0x505   : > { %v1088_v29 = vadd.f32 %v2367_v27, %v1048_v24  ;;  %v2287_v33 = vunpack.c.h.bf16 %v3350_v11 }
 0x507   : > { %2557 = vtanh.f32 %v1088_v29 }
 0x511   : > { %v2558_v30 = vpop.eup %2557 }
 0x512   : > { %1094 = vst [vmem:[#allocation2] sm:$0x3] %v2558_v30  ;;  %1095 = vst [vmem:[#allocation3] sm:$0x3] %v2558_v30  ;;  %v1096_v31 = vpack.c.bf16 %v2558_v30, %v2558_v30  ;;  %v2270_v30 = vunpack.c.l.bf16 %v3317_v55 }
 0x514   : > { %2397 = vmatmul.mubr.bf16.vlgmr.msra.gmra.mrb[4].mxu0 %v1096_v31 }
 0x5e7   : > { %v1195_v32 = vpop.f32.mrb[4].mxu0 }
 0x5e8   : > { %v1272_v37 = vrot.slane %v1195_v32, %v3208_v12  ;;  %v2398_v38 = vpop.f32.mrb[5].mxu0 }
 0x5e9   : > { %v1198_v40 = vpop.f32.mrb[6].mxu0 }
 0x5ea   : > { %v1280_v41 = vrot.slane %v1272_v37, %v3208_v12  ;;  %v2399_v42 = vpop.f32.mrb[7].mxu0  ;;  %v1273_v63 = vcombine.high %v1272_v37, %v1272_v37  ;;  %v3363_v40 = vld [vmem:[#allocation9 + $0x78] sm:$0xff]  }
 0x5eb   : > { %v2310_v48 = vunpack.c.l.bf16 %v3363_v40 }
 0x5ec   : > { %v3311_v47 = vrot.slane %v1280_v41, %v3202_v10  ;;  %v1287_v20 = vrot.slane %v1273_v63, %v3208_v12 }
 0x5ee   : > { %v1299_v6 = vadd.f32 %v2251_v43, %v3311_v47  ;;  %v1298_v49 = vadd.f32 %v2250_v44, %v3311_v47  ;;  %v1300_v50 = vadd.f32 %v2254_v45, %v3311_v47  ;;  %v1305_v52 = vadd.f32 %v2263_v46, %v3311_v47 }
 0x5ef   : > { %v1301_v56 = vadd.f32 %v2255_v51, %v3311_v47  ;;  %v1307_v58 = vadd.f32 %v2267_v53, %v3311_v47  ;;  %v1302_v61 = vadd.f32 %v2258_v57, %v3311_v47  ;;  %v1309_v0 = vadd.f32 %v2271_v59, %v3311_v47  ;;  %v3373_v51 = vld [vmem:[#allocation9 + $0x58] sm:$0xff]  }
 0x5f0   : > { %2559 = vtanh.f32 %v1299_v6  ;;  %v1303_v16 = vadd.f32 %v2259_v62, %v3311_v47  ;;  %v1311_v14 = vadd.f32 %v2275_v1, %v3311_v47  ;;  %v1304_v21 = vadd.f32 %v2262_v5, %v3311_v47 }
 0x5f1   : > { %2561 = vtanh.f32 %v1298_v49  ;;  %v3345_v12 = vrot.slane %v1287_v20, %v3202_v10  ;;  %v1313_v25 = vadd.f32 %v2279_v8, %v3311_v47  ;;  %v1306_v29 = vadd.f32 %v2266_v22, %v3311_v47  ;;  %v3354_v10 = vld [vmem:[#allocation9 + $0x50] sm:$0xff]   ;;  %v3390_v8 = vld [vmem:[#allocation9 + $0x68] sm:$0xff]  }
 0x5f2   : > { %2563 = vtanh.f32 %v1300_v50  ;;  %v2291_v42 = vunpack.c.h.bf16 %v3354_v10  ;;  %v1308_v43 = vadd.f32 %v2270_v30, %v3311_v47  ;;  %v2306_v44 = vunpack.c.l.bf16 %v3359_v36 }
 0x5f3   : > { %2565 = vtanh.f32 %v1305_v52  ;;  %v1315_v32 = vadd.f32 %v2283_v23, %v3345_v12  ;;  %v1317_v46 = vadd.f32 %v2287_v33, %v3345_v12  ;;  %v1310_v50 = vadd.f32 %v2274_v39, %v3311_v47 }
 0x5f4   : > { %2567 = vtanh.f32 %v1301_v56  ;;  %v1319_v53 = vadd.f32 %v2291_v42, %v3345_v12  ;;  %v1326_v55 = vadd.f32 %v2306_v44, %v3345_v12  ;;  %v2295_v57 = vunpack.c.h.bf16 %v3373_v51 }
 0x5f5   : > { %2569 = vtanh.f32 %v1307_v58  ;;  %v1328_v58 = vadd.f32 %v2310_v48, %v3345_v12  ;;  %v1312_v63 = vadd.f32 %v2278_v54, %v3311_v47  ;;  %v2286_v20 = vunpack.c.l.bf16 %v3350_v11 }
 0x5f6   : > { %2571 = vtanh.f32 %v1302_v61  ;;  %v3382_v61 = vld [vmem:[#allocation9 + $0x60] sm:$0xff]   ;;  %v1321_v2 = vadd.f32 %v2295_v57, %v3345_v12  ;;  %v2290_v23 = vunpack.c.l.bf16 %v3354_v10 }
 0x5f7   : > { %2573 = vtanh.f32 %v1309_v0  ;;  %v2282_v0 = vunpack.c.l.bf16 %v3339_v15  ;;  %v2303_v15 = vunpack.c.h.bf16 %v3390_v8  ;;  %v1316_v22 = vadd.f32 %v2286_v20, %v3345_v12 }
 0x5f8   : > { %2575 = vtanh.f32 %v1303_v16  ;;  %v1318_v10 = vadd.f32 %v2290_v23, %v3345_v12 }
 0x5f9   : > { %2577 = vtanh.f32 %v1311_v14  ;;  %v1314_v47 = vadd.f32 %v2282_v0, %v3345_v12  ;;  %v1477_v0 = vpop.permute.xlu1 %1476 }
 0x5fa   : > { %v2560_v4 = vpop.eup %2559  ;;  %2579 = vtanh.f32 %v1304_v21 }
 0x5fb   : > { %v2562_v9 = vpop.eup %2561  ;;  %v1370_v13 = vmul.f32 %v2560_v4, %v3332_v3  ;;  %2581 = vtanh.f32 %v1313_v25  ;;  %v2299_v4 = vunpack.c.h.bf16 %v3382_v61 }
 0x5fc   : > { %v2564_v17 = vpop.eup %2563  ;;  %v1369_v18 = vmul.f32 %v2562_v9, %v3332_v3  ;;  %2583 = vtanh.f32 %v1306_v29 }
 0x5fd   : > { %v2566_v19 = vpop.eup %2565  ;;  %1403 = vadd.xlane.f32.xlu0 %v1370_v13  ;;  %v1371_v24 = vmul.f32 %v2564_v17, %v3332_v3  ;;  %2585 = vtanh.f32 %v1315_v32  ;;  %v1323_v14 = vadd.f32 %v2299_v4, %v3345_v12 }
 0x5fe   : > { %1401 = vadd.xlane.f32.xlu1 %v1369_v18  ;;  %v2568_v26 = vpop.eup %2567  ;;  %v1376_v27 = vmul.f32 %v2566_v19, %v3332_v3  ;;  %2587 = vtanh.f32 %v1308_v43  ;;  %v2298_v43 = vunpack.c.l.bf16 %v3382_v61  ;;  %v1473_v61 = vpop.permute.xlu0 %1472 }
 0x5ff   : > { %v2570_v28 = vpop.eup %2569  ;;  %v1372_v31 = vmul.f32 %v2568_v26, %v3332_v3  ;;  %2589 = vtanh.f32 %v1317_v46  ;;  %v1325_v26 = vadd.f32 %v2303_v15, %v3345_v12 }
 0x600   : > { %v2572_v37 = vpop.eup %2571  ;;  %v1378_v38 = vmul.f32 %v2570_v28, %v3332_v3  ;;  %2591 = vtanh.f32 %v1310_v50 }
 0x601   : > { %1405 = vadd.xlane.f32.xlu0 %v1371_v24  ;;  %v2574_v41 = vpop.eup %2573  ;;  %v1373_v45 = vmul.f32 %v2572_v37, %v3332_v3  ;;  %2593 = vtanh.f32 %v1319_v53  ;;  %v2311_v37 = vunpack.c.h.bf16 %v3363_v40 }
 0x602   : > { %1415 = vadd.xlane.f32.xlu1 %v1376_v27  ;;  %v2576_v6 = vpop.eup %2575  ;;  %v1380_v49 = vmul.f32 %v2574_v41, %v3332_v3  ;;  %2595 = vtanh.f32 %v1326_v55  ;;  %v2307_v27 = vunpack.c.h.bf16 %v3359_v36  ;;  %v1485_v4 = vpop.permute.xlu0 %1484 }
 0x603   : > { %v2578_v52 = vpop.eup %2577  ;;  %v1374_v56 = vmul.f32 %v2576_v6, %v3332_v3  ;;  %2597 = vtanh.f32 %v1328_v58  ;;  %v1322_v6 = vadd.f32 %v2298_v43, %v3345_v12 }
 0x604   : > { %v2580_v59 = vpop.eup %2579  ;;  %v1382_v60 = vmul.f32 %v2578_v52, %v3332_v3  ;;  %2599 = vtanh.f32 %v1312_v63  ;;  %v1327_v36 = vadd.f32 %v2307_v27, %v3345_v12 }
 0x605   : > { %1407 = vadd.xlane.f32.xlu0 %v1372_v31  ;;  %v2582_v62 = vpop.eup %2581  ;;  %v1375_v1 = vmul.f32 %v2580_v59, %v3332_v3  ;;  %2601 = vtanh.f32 %v1321_v2  ;;  %v2294_v31 = vunpack.c.l.bf16 %v3373_v51 }
 0x606   : > { %1419 = vadd.xlane.f32.xlu1 %v1378_v38  ;;  %v2584_v16 = vpop.eup %2583  ;;  %v1384_v5 = vmul.f32 %v2582_v62, %v3332_v3  ;;  %2603 = vtanh.f32 %v1314_v47  ;;  %v1493_v47 = vpop.permute.xlu0 %1492 }
 0x607   : > { %v2586_v9 = vpop.eup %2585  ;;  %v1377_v13 = vmul.f32 %v2584_v16, %v3332_v3  ;;  %2605 = vtanh.f32 %v1323_v14  ;;  %v1320_v42 = vadd.f32 %v2294_v31, %v3345_v12  ;;  %v1481_v16 = vpop.permute.xlu1 %1480 }
 0x608   : > { %v2588_v17 = vpop.eup %2587  ;;  %v1386_v18 = vmul.f32 %v2586_v9, %v3332_v3  ;;  %2607 = vtanh.f32 %v1316_v22 }
 0x609   : > { %1409 = vadd.xlane.f32.xlu0 %v1373_v45  ;;  %v2590_v19 = vpop.eup %2589  ;;  %v1379_v25 = vmul.f32 %v2588_v17, %v3332_v3  ;;  %2609 = vtanh.f32 %v1325_v26  ;;  %v1329_v45 = vadd.f32 %v2311_v37, %v3345_v12 }
 0x60a   : > { %1423 = vadd.xlane.f32.xlu1 %v1380_v49  ;;  %v2592_v21 = vpop.eup %2591  ;;  %v1388_v28 = vmul.f32 %v2590_v19, %v3332_v3  ;;  %2611 = vtanh.f32 %v1318_v10  ;;  %v2302_v49 = vunpack.c.l.bf16 %v3390_v8 }
 0x60b   : > { %v2594_v24 = vpop.eup %2593  ;;  %v1381_v33 = vmul.f32 %v2592_v21, %v3332_v3  ;;  %2613 = vtanh.f32 %v1327_v36  ;;  %v1489_v20 = vpop.permute.xlu1 %1488 }
 0x60c   : > { %v2596_v11 = vpop.eup %2595  ;;  %v1390_v39 = vmul.f32 %v2594_v24, %v3332_v3  ;;  %2615 = vtanh.f32 %v1320_v42  ;;  %v1324_v54 = vadd.f32 %v2302_v49, %v3345_v12 }
 0x60d   : > { %1411 = vadd.xlane.f32.xlu0 %v1374_v56  ;;  %v2598_v29 = vpop.eup %2597  ;;  %v3405_v30 = vmul.f32 %v2596_v11, %v3332_v3  ;;  %2617 = vtanh.f32 %v1329_v45 }
 0x60e   : > { %1427 = vadd.xlane.f32.xlu1 %v1382_v60  ;;  %v3410_v32 = vmul.f32 %v2598_v29, %v3332_v3  ;;  %v2600_v38 = vpop.eup %2599  ;;  %2619 = vtanh.f32 %v1322_v6 }
 0x60f   : > { %v2602_v41 = vpop.eup %2601  ;;  %v1383_v44 = vmul.f32 %v2600_v38, %v3332_v3  ;;  %2621 = vtanh.f32 %v1324_v54  ;;  %v1497_v14 = vpop.permute.xlu1 %1496 }
 0x610   : > { %v2604_v46 = vpop.eup %2603  ;;  %v1392_v48 = vmul.f32 %v2602_v41, %v3332_v3 }
 0x611   : > { %1413 = vadd.xlane.f32.xlu0 %v1375_v1  ;;  %v2606_v40 = vpop.eup %2605  ;;  %v1385_v50 = vmul.f32 %v2604_v46, %v3332_v3 }
 0x612   : > { %1431 = vadd.xlane.f32.xlu1 %v1384_v5  ;;  %v2608_v51 = vpop.eup %2607  ;;  %v1394_v52 = vmul.f32 %v2606_v40, %v3332_v3 }
 0x613   : > { %v2610_v53 = vpop.eup %2609  ;;  %v1387_v55 = vmul.f32 %v2608_v51, %v3332_v3  ;;  %v1505_v17 = vpop.permute.xlu1 %1504 }
 0x614   : > { %v2612_v56 = vpop.eup %2611  ;;  %v1396_v57 = vmul.f32 %v2610_v53, %v3332_v3 }
 0x615   : > { %1417 = vadd.xlane.f32.xlu0 %v1377_v13  ;;  %v2614_v58 = vpop.eup %2613  ;;  %v1389_v59 = vmul.f32 %v2612_v56, %v3332_v3  ;;  %v1501_v13 = vpop.permute.xlu0 %1500 }
 0x616   : > { %1435 = vadd.xlane.f32.xlu1 %v1386_v18  ;;  %v2616_v60 = vpop.eup %2615  ;;  %v1398_v62 = vmul.f32 %v2614_v58, %v3332_v3 }
 0x617   : > { %v2618_v63 = vpop.eup %2617  ;;  %v1391_v12 = vmul.f32 %v2616_v60, %v3332_v3  ;;  %v1513_v19 = vpop.permute.xlu1 %1512 }
 0x618   : > { %v2620_v1 = vpop.eup %2619  ;;  %v1400_v2 = vmul.f32 %v2618_v63, %v3332_v3 }
 0x619   : > { %1421 = vadd.xlane.f32.xlu0 %v1379_v25  ;;  %v1393_v5 = vmul.f32 %v2620_v1, %v3332_v3  ;;  %v2622_v8 = vpop.eup %2621  ;;  %v1509_v15 = vpop.permute.xlu0 %1508 }
 0x61a   : > { %1439 = vadd.xlane.f32.xlu1 %v1388_v28  ;;  %v1395_v9 = vmul.f32 %v2622_v8, %v3332_v3 }
 0x61b   : > { %v1521_v22 = vpop.permute.xlu1 %1520 }
 0x61d   : > { %1425 = vadd.xlane.f32.xlu0 %v1381_v33  ;;  %v1517_v18 = vpop.permute.xlu0 %1516 }
 0x61e   : > { %1443 = vadd.xlane.f32.xlu1 %v1390_v39 }
 0x61f   : > { %v3440_v24 = vpop.permute.xlu1 %1528 }
 0x621   : > { %1429 = vadd.xlane.f32.xlu0 %v1383_v44  ;;  %v3436_v21 = vpop.permute.xlu0 %1524 }
 0x622   : > { %1447 = vadd.xlane.f32.xlu1 %v1392_v48 }
 0x623   : > { %v1540_v25 = vpop.permute.xlu1 %1539 }
 0x625   : > { %1433 = vadd.xlane.f32.xlu0 %v1385_v50  ;;  %v3438_v23 = vpop.permute.xlu0 %1532 }
 0x626   : > { %1451 = vadd.xlane.f32.xlu1 %v1394_v52 }
 0x627   : > { %v3446_v27 = vpop.permute.xlu1 %1547 }
 0x629   : > { %1437 = vadd.xlane.f32.xlu0 %v1387_v55  ;;  %v3442_v3 = vpop.permute.xlu0 %1543 }
 0x62a   : > { %1455 = vadd.xlane.f32.xlu1 %v1396_v57 }
 0x62b   : > { %v3450_v28 = vpop.permute.xlu1 %1555 }
 0x62d   : > { %1441 = vadd.xlane.f32.xlu0 %v1389_v59  ;;  %v3444_v26 = vpop.permute.xlu0 %1551 }
 0x62e   : > { %1459 = vadd.xlane.f32.xlu1 %v1398_v62 }
 0x631   : > { %1445 = vadd.xlane.f32.xlu0 %v1391_v12  ;;  %v3448_v11 = vpop.permute.xlu0 %1559 }
 0x632   : > { %1463 = vadd.xlane.f32.xlu1 %v1400_v2 }
 0x635   : > { %1449 = vadd.xlane.f32.xlu0 %v1393_v5  ;;  %v3452_v29 = vpop.permute.xlu0 %1567 }
 0x639   : > { %1453 = vadd.xlane.f32.xlu0 %v1395_v9  ;;  %v3456_v10 = vpop.permute.xlu0 %1575 }
 0x63d   : > { %1457 = vadd.xlane.f32.xlu0 %v3405_v30  ;;  %v3454_v30 = vpop.permute.xlu1 %1563 }
 0x641   : > { %1461 = vadd.xlane.f32.xlu0 %v3410_v32  ;;  %v3458_v31 = vpop.permute.xlu1 %1571  ;;  %v3460_v32 = vpop.permute.xlu0 %1583 }
 0x645   : > { %v3462_v33 = vpop.permute.xlu1 %1579  ;;  %v3464_v36 = vpop.permute.xlu0 %1591 }
 0x649   : > { %v3466_v37 = vpop.permute.xlu1 %1587  ;;  %v3468_v38 = vpop.permute.xlu0 %1599 }
 0x64d   : > { %v3470_v39 = vpop.permute.xlu1 %1595 }
 0x68a   : > { %v1404_v41 = vpop.xlane.xlu0 %1403 }
 0x68b   : > { %v1634_v42 = vadd.f32 %v1477_v0, %v1404_v41  ;;  %v1402_v43 = vpop.xlane.xlu1 %1401 }
 0x68c   : > { %v1633_v44 = vadd.f32 %v1473_v61, %v1402_v43 }
 0x68d   : > { %1701 = vperm.xlu0 %2509, %v1634_v42  }
 0x68e   : > { %1698 = vperm.xlu1 %2510, %v1633_v44   ;;  %v1406_v45 = vpop.xlane.xlu0 %1405 }
 0x68f   : > { %v1635_v46 = vadd.f32 %v1481_v16, %v1406_v45  ;;  %v1416_v48 = vpop.xlane.xlu1 %1415 }
 0x690   : > { %v1640_v57 = vadd.f32 %v1501_v13, %v1416_v48 }
 0x692   : > { %1704 = vperm.xlu1 %2510, %v1635_v46   ;;  %v1408_v40 = vpop.xlane.xlu0 %1407 }
 0x693   : > { %v1636_v6 = vadd.f32 %v1485_v4, %v1408_v40  ;;  %v1420_v49 = vpop.xlane.xlu1 %1419 }
 0x694   : > { %v1642_v60 = vadd.f32 %v1509_v15, %v1420_v49 }
 0x695   : > { %1707 = vperm.xlu0 %2509, %v1636_v6  }
 0x696   : > { %v1410_v50 = vpop.xlane.xlu0 %1409 }
 0x697   : > { %v1637_v51 = vadd.f32 %v1489_v20, %v1410_v50  ;;  %v1424_v52 = vpop.xlane.xlu1 %1423 }
 0x698   : > { %v1644_v2 = vadd.f32 %v1517_v18, %v1424_v52 }
 0x699   : > { %1710 = vperm.xlu1 %2510, %v1637_v51  }
 0x69a   : > { %v1412_v53 = vpop.xlane.xlu0 %1411 }
 0x69b   : > { %v1638_v54 = vadd.f32 %v1493_v47, %v1412_v53  ;;  %v1428_v55 = vpop.xlane.xlu1 %1427 }
 0x69c   : > { %v1646_v9 = vadd.f32 %v3436_v21, %v1428_v55 }
 0x69d   : > { %1713 = vperm.xlu0 %2509, %v1638_v54  }
 0x69e   : > { %v1414_v56 = vpop.xlane.xlu0 %1413 }
 0x69f   : > { %v1639_v58 = vadd.f32 %v1497_v14, %v1414_v56  ;;  %v1432_v62 = vpop.xlane.xlu1 %1431 }
 0x6a1   : > { %1716 = vperm.xlu1 %2510, %v1639_v58   ;;  %1719 = vperm.xlu0 %2509, %v1640_v57  }
 0x6a2   : > { %v1418_v59 = vpop.xlane.xlu0 %1417 }
 0x6a3   : > { %v1641_v61 = vadd.f32 %v1505_v17, %v1418_v59  ;;  %v1436_v12 = vpop.xlane.xlu1 %1435 }
 0x6a4   : > { %v1650_v14 = vadd.f32 %v3442_v3, %v1436_v12 }
 0x6a5   : > { %1722 = vperm.xlu1 %2510, %v1641_v61   ;;  %1725 = vperm.xlu0 %2509, %v1642_v60  }
 0x6a6   : > { %v1422_v63 = vpop.xlane.xlu0 %1421 }
 0x6a7   : > { %v1643_v0 = vadd.f32 %v1513_v19, %v1422_v63  ;;  %v1440_v5 = vpop.xlane.xlu1 %1439  ;;  %v1804_v63 = vadd.s32 4294967280, %v3224_v34 }
 0x6a8   : > { %v1652_v18 = vadd.f32 %v3444_v26, %v1440_v5  ;;  %v1818_v5 = vadd.s32 4294967264, %v3224_v34 }
 0x6a9   : > { %1728 = vperm.xlu1 %2510, %v1643_v0  }
 0x6aa   : > { %v1426_v1 = vpop.xlane.xlu0 %1425 }
 0x6ab   : > { %v1645_v16 = vadd.f32 %v1521_v22, %v1426_v1  ;;  %v1444_v20 = vpop.xlane.xlu1 %1443 }
 0x6ad   : > { %1731 = vperm.xlu1 %2510, %v1644_v2   ;;  %v1811_v2 = vadd.s32 4294967272, %v3224_v34 }
 0x6ae   : > { %v1430_v4 = vpop.xlane.xlu0 %1429 }
 0x6af   : > { %v1448_v22 = vpop.xlane.xlu1 %1447 }
 0x6b1   : > { %1734 = vperm.xlu1 %2510, %v1645_v16   ;;  %v1807_v16 = vsub.s32 %v1804_v63, %v3197_v7  ;;  %v1881_v63 = vadd.s32 4294967192, %v3224_v34 }
 0x6b2   : > { %v1434_v8 = vpop.xlane.xlu0 %1433 }
 0x6b3   : > { %v1649_v47 = vadd.f32 %v1540_v25, %v1434_v8  ;;  %v1654_v25 = vadd.f32 %v3448_v11, %v1444_v20  ;;  %v1452_v3 = vpop.xlane.xlu1 %1451  ;;  %v1647_v11 = vadd.f32 %v3440_v24, %v1430_v4  ;;  %v1825_v8 = vadd.s32 4294967256, %v3224_v34 }
 0x6b5   : > { %1737 = vperm.xlu1 %2510, %v1646_v9   ;;  %1746 = vperm.xlu0 %2509, %v1649_v47   ;;  %v1814_v47 = vsub.s32 %v1811_v2, %v3197_v7 }
 0x6b6   : > { %v1438_v13 = vpop.xlane.xlu0 %1437 }
 0x6b7   : > { %v1651_v15 = vadd.f32 %v3446_v27, %v1438_v13  ;;  %v1656_v27 = vadd.f32 %v3452_v29, %v1448_v22  ;;  %v1456_v45 = vpop.xlane.xlu1 %1455  ;;  %v1648_v29 = vadd.f32 %v3438_v23, %v1432_v62  ;;  %v1797_v62 = vadd.s32 4294967288, %v3224_v34 }
 0x6b8   : > { %v1832_v13 = vadd.s32 4294967248, %v3224_v34  ;;  %v1828_v22 = vsub.s32 %v1825_v8, %v3197_v7 }
 0x6b9   : > { %1749 = vperm.xlu1 %2510, %v1650_v14   ;;  %1752 = vperm.xlu0 %2509, %v1651_v15   ;;  %v1800_v1 = vsub.s32 %v1797_v62, %v3197_v7 }
 0x6ba   : > { %v1442_v17 = vpop.xlane.xlu0 %1441 }
 0x6bb   : > { %v1653_v19 = vadd.f32 %v3450_v28, %v1442_v17  ;;  %v1658_v28 = vadd.f32 %v3456_v10, %v1452_v3  ;;  %v1460_v48 = vpop.xlane.xlu1 %1459  ;;  %v1839_v3 = vadd.s32 4294967240, %v3224_v34 }
 0x6bc   : > { %v1662_v10 = vadd.f32 %v3464_v36, %v1460_v48 }
 0x6bd   : > { %1755 = vperm.xlu1 %2510, %v1652_v18   ;;  %1758 = vperm.xlu0 %2509, %v1653_v19   ;;  %v1821_v19 = vsub.s32 %v1818_v5, %v3197_v7 }
 0x6be   : > { %v1446_v21 = vpop.xlane.xlu0 %1445 }
 0x6bf   : > { %v1655_v41 = vadd.f32 %v3454_v30, %v1446_v21  ;;  %v1660_v30 = vadd.f32 %v3460_v32, %v1456_v45  ;;  %v1464_v6 = vpop.xlane.xlu1 %1463 }
 0x6c0   : > { %v1664_v24 = vadd.f32 %v3468_v38, %v1464_v6 }
 0x6c1   : > { %1761 = vperm.xlu1 %2510, %v1654_v25   ;;  %1764 = vperm.xlu0 %2509, %v1655_v41  }
 0x6c2   : > { %v1450_v42 = vpop.xlane.xlu0 %1449 }
 0x6c3   : > { %v1657_v43 = vadd.f32 %v3458_v31, %v1450_v42  ;;  %v1846_v42 = vadd.s32 4294967232, %v3224_v34 }
 0x6c5   : > { %1767 = vperm.xlu1 %2510, %v1656_v27   ;;  %1770 = vperm.xlu0 %2509, %v1657_v43   ;;  %v1835_v43 = vsub.s32 %v1832_v13, %v3197_v7 }
 0x6c6   : > { %v1454_v26 = vpop.xlane.xlu0 %1453 }
 0x6c7   : > { %v1659_v44 = vadd.f32 %v3462_v33, %v1454_v26 }
 0x6c9   : > { %1773 = vperm.xlu1 %2510, %v1658_v28   ;;  %1776 = vperm.xlu0 %2509, %v1659_v44  }
 0x6ca   : > { %v1458_v46 = vpop.xlane.xlu0 %1457 }
 0x6cb   : > { %v1661_v31 = vadd.f32 %v3466_v37, %v1458_v46  ;;  %v1860_v46 = vadd.s32 4294967216, %v3224_v34 }
 0x6cd   : > { %1740 = vperm.xlu1 %2510, %v1647_v11   ;;  %1779 = vperm.xlu0 %2509, %v1660_v30   ;;  %v1853_v30 = vadd.s32 4294967224, %v3224_v34 }
 0x6ce   : > { %v1462_v33 = vpop.xlane.xlu0 %1461 }
 0x6cf   : > { %v1663_v40 = vadd.f32 %v3470_v39, %v1462_v33  ;;  %v1842_v33 = vsub.s32 %v1839_v3, %v3197_v7 }
 0x6d1   : > { %1743 = vperm.xlu1 %2510, %v1648_v29   ;;  %1782 = vperm.xlu0 %2509, %v1661_v31  }
 0x6d5   : > { %1785 = vperm.xlu0 %2509, %v1662_v10  }
 0x6d9   : > { %1788 = vperm.xlu0 %2509, %v1663_v40   ;;  %v1849_v40 = vsub.s32 %v1846_v42, %v3197_v7 }
 0x6dd   : > { %1791 = vperm.xlu0 %2509, %v1664_v24  }
 0x70c   : > { %v3494_v23 = vpop.permute.xlu0 %1701 }
 0x70d   : > { %v3490_v32 = vpop.permute.xlu1 %1698  ;;  %v1801_v41 = vrot.slane %v3494_v23, %v1800_v1 }
 0x70e   : > { %v1796_v25 = vrot.slane %v3490_v32, %v3228_v35 }
 0x710   : > { %v1803_v48 = vsel %vm1802_vm3, %v1801_v41, %v1796_v25 }
 0x711   : > { %v3492_v49 = vpop.permute.xlu1 %1704 }
 0x712   : > { %v1808_v27 = vrot.slane %v3492_v49, %v1807_v16 }
 0x714   : > { %v3498_v50 = vpop.permute.xlu0 %1707  ;;  %v1810_v6 = vsel %vm1809_vm4, %v1808_v27, %v1803_v48 }
 0x715   : > { %v1815_v44 = vrot.slane %v3498_v50, %v1814_v47 }
 0x717   : > { %v1817_v23 = vsel %vm1816_vm5, %v1815_v44, %v1810_v6 }
 0x718   : > { %v3496_v37 = vpop.permute.xlu1 %1710 }
 0x71c   : > { %v3502_v51 = vpop.permute.xlu0 %1713 }
 0x71d   : > { %v1829_v10 = vrot.slane %v3502_v51, %v1828_v22 }
 0x720   : > { %v3500_v36 = vpop.permute.xlu1 %1716  ;;  %v3508_v38 = vpop.permute.xlu0 %1719 }
 0x721   : > { %v1836_v24 = vrot.slane %v3500_v36, %v1835_v43  ;;  %v1843_v62 = vrot.slane %v3508_v38, %v1842_v33  ;;  %v1895_v38 = vadd.s32 4294967176, %v3224_v34 }
 0x724   : > { %v3504_v39 = vpop.permute.xlu1 %1722  ;;  %v3512_v54 = vpop.permute.xlu0 %1725 }
 0x728   : > { %v3506_v52 = vpop.permute.xlu1 %1728 }
 0x72c   : > { %v3510_v53 = vpop.permute.xlu1 %1731 }
 0x730   : > { %v3514_v55 = vpop.permute.xlu1 %1734 }
 0x734   : > { %v3516_v56 = vpop.permute.xlu1 %1737  ;;  %v1747_v57 = vpop.permute.xlu0 %1746 }
 0x735   : > { %v1905_v20 = vrot.slane %v1747_v57, %v3228_v35  ;;  %v1822_v35 = vrot.slane %v3496_v37, %v1821_v19  ;;  %v1867_v37 = vadd.s32 4294967208, %v3224_v34 }
 0x737   : > { %v1824_v51 = vsel %vm1823_vm6, %v1822_v35, %v1817_v23  ;;  %v1870_v5 = vsub.s32 %v1867_v37, %v3197_v7 }
 0x738   : > { %v1750_v58 = vpop.permute.xlu1 %1749  ;;  %v1753_v59 = vpop.permute.xlu0 %1752 }
 0x739   : > { %v1909_v4 = vrot.slane %v1750_v58, %v1800_v1  ;;  %v1914_v14 = vrot.slane %v1753_v59, %v1807_v16  ;;  %v1856_v58 = vsub.s32 %v1853_v30, %v3197_v7  ;;  %v1863_v59 = vsub.s32 %v1860_v46, %v3197_v7 }
 0x73a   : > { %v1850_v1 = vrot.slane %v3504_v39, %v1849_v40 }
 0x73b   : > { %v1910_v17 = vsel %vm1802_vm3, %v1909_v4, %v1905_v20  ;;  %v1857_v39 = vrot.slane %v3512_v54, %v1856_v58  ;;  %v1898_v54 = vsub.s32 %v1895_v38, %v3197_v7 }
 0x73c   : > { %v1756_v60 = vpop.permute.xlu1 %1755  ;;  %v1759_v61 = vpop.permute.xlu0 %1758  ;;  %v1915_v26 = vsel %vm1809_vm4, %v1914_v14, %v1910_v17 }
 0x73d   : > { %v1919_v18 = vrot.slane %v1756_v60, %v1814_v47  ;;  %v1924_v28 = vrot.slane %v1759_v61, %v1821_v19  ;;  %v1874_v60 = vadd.s32 4294967200, %v3224_v34  ;;  %v1831_v61 = vsel %vm1830_vm7, %v1829_v10, %v1824_v51 }
 0x73f   : > { %v1920_v45 = vsel %vm1816_vm5, %v1919_v18, %v1915_v26  ;;  %v1877_v20 = vsub.s32 %v1874_v60, %v3197_v7  ;;  %v1864_v18 = vrot.slane %v3506_v52, %v1863_v59 }
 0x740   : > { %v1762_v0 = vpop.permute.xlu1 %1761  ;;  %v3520_v12 = vpop.permute.xlu0 %1764  ;;  %v1925_v32 = vsel %vm1823_vm6, %v1924_v28, %v1920_v45 }
 0x741   : > { %v1929_v11 = vrot.slane %v1762_v0, %v1828_v22  ;;  %v1934_v49 = vrot.slane %v3520_v12, %v1835_v43  ;;  %v1888_v0 = vadd.s32 4294967184, %v3224_v34  ;;  %v1838_v12 = vsel %vm1837_vm8, %v1836_v24, %v1831_v61 }
 0x742   : > { %v1845_v14 = vsel %vm1844_vm9, %v1843_v62, %v1838_v12  ;;  %v1871_v22 = vrot.slane %v3510_v53, %v1870_v5  ;;  %v1878_v3 = vrot.slane %v3514_v55, %v1877_v20 }
 0x743   : > { %v1930_v50 = vsel %vm1830_vm7, %v1929_v11, %v1925_v32  ;;  %v1852_v17 = vsel %vm1851_vm10, %v1850_v1, %v1845_v14 }
 0x744   : > { %v3527_v9 = vpop.permute.xlu0 %1770  ;;  %v1768_v15 = vpop.permute.xlu1 %1767  ;;  %v1935_v2 = vsel %vm1837_vm8, %v1934_v49, %v1930_v50  ;;  %v1859_v52 = vsel %vm1858_vm11, %v1857_v39, %v1852_v17 }
 0x745   : > { %v1939_v57 = vrot.slane %v1768_v15, %v1842_v33  ;;  %v1944_v4 = vrot.slane %v3527_v9, %v1849_v40  ;;  %v1884_v15 = vsub.s32 %v1881_v63, %v3197_v7  ;;  %v1891_v9 = vsub.s32 %v1888_v0, %v3197_v7 }
 0x746   : > { %v1866_v26 = vsel %vm1865_vm12, %v1864_v18, %v1859_v52 }
 0x747   : > { %v1940_v8 = vsel %vm1844_vm9, %v1939_v57, %v1935_v2  ;;  %v1885_v53 = vrot.slane %v3516_v56, %v1884_v15  ;;  %v1873_v45 = vsel %vm1872_vm13, %v1871_v22, %v1866_v26 }
 0x748   : > { %v3535_v21 = vpop.permute.xlu0 %1776  ;;  %v1774_v29 = vpop.permute.xlu1 %1773  ;;  %v1945_v19 = vsel %vm1851_vm10, %v1944_v4, %v1940_v8  ;;  %v1880_v35 = vsel %vm1879_vm14, %v1878_v3, %v1873_v45 }
 0x749   : > { %v1949_v47 = vrot.slane %v1774_v29, %v1856_v58  ;;  %v1954_v34 = vrot.slane %v3535_v21, %v1863_v59  ;;  %v1887_v46 = vsel %vm1886_vm15, %v1885_v53, %v1880_v35 }
 0x74b   : > { %v1950_v25 = vsel %vm1858_vm11, %v1949_v47, %v1945_v19 }
 0x74c   : > { %v3550_v31 = vpop.permute.xlu0 %1779  ;;  %v1741_v16 = vpop.permute.xlu1 %1740  ;;  %v1955_v28 = vsel %vm1865_vm12, %v1954_v34, %v1950_v25 }
 0x74d   : > { %v1959_v41 = vrot.slane %v3550_v31, %v1870_v5  ;;  %v1892_v7 = vrot.slane %v1741_v16, %v1891_v9 }
 0x74f   : > { %v1960_v55 = vsel %vm1872_vm13, %v1959_v41, %v1955_v28  ;;  %v1894_v48 = vsel %vm1893_vm1, %v1892_v7, %v1887_v46 }
 0x750   : > { %v1783_v36 = vpop.permute.xlu0 %1782  ;;  %v1744_v42 = vpop.permute.xlu1 %1743 }
 0x751   : > { %v1964_v27 = vrot.slane %v1783_v36, %v1877_v20  ;;  %v1899_v11 = vrot.slane %v1744_v42, %v1898_v54 }
 0x753   : > { %v1965_v56 = vsel %vm1879_vm14, %v1964_v27, %v1960_v55  ;;  %v1901_v33 = vsel %vm1900_vm2, %v1899_v11, %v1894_v48 }
 0x754   : > { %v1786_v13 = vpop.permute.xlu0 %1785 }
 0x755   : > { %v1969_v21 = vrot.slane %v1786_v13, %v1884_v15 }
 0x757   : > { %v1970_v29 = vsel %vm1886_vm15, %v1969_v21, %v1965_v56 }
 0x758   : > { %v1789_v43 = vpop.permute.xlu0 %1788 }
 0x759   : > { %v1974_v44 = vrot.slane %v1789_v43, %v1891_v9 }
 0x75b   : > { %v1975_v10 = vsel %vm1893_vm1, %v1974_v44, %v1970_v29 }
 0x75c   : > { %v1792_v30 = vpop.permute.xlu0 %1791 }
 0x75d   : > { %v1979_v31 = vrot.slane %v1792_v30, %v1898_v54 }
 0x75f   : > { %v1980_v40 = vsel %vm1900_vm2, %v1979_v31, %v1975_v10 }
 0x760   : > { %v1981_v6 = vsel %vm656_vm0, %v1980_v40, %v1901_v33 }
 0x761   : > { %1983 = vst [vmem:[%s3183_s30] sm:$0x3] %v1981_v6 }
 0x762   : > { %2778 = shalt.err (!%p2775_p3)
}
 0x763   : > { %s2779_s15 = scalar_lea.hbm %s3607_s13, 32  ;;  %s2783_s14 = scalar_lea.hbm %s3697_s10, 160 }
 0x764   : > { %p2780_p11 = scmp.ne.s32.totalorder %s3607_s13, %s2779_s15  ;;  %p2784_p12 = scmp.lt.u32.totalorder %s3607_s13, %s3697_s10 }
 0x765   : > { %p2785_p4 = scmp.lt.u32.totalorder %s2783_s14, %s2779_s15  ;;  %p2787_p2 = scmp.lt.u32.totalorder %s2779_s15, %s3607_s13 }
 0x766   : > { %p2781_p5 = pnand %p2780_p11, %p3698_p10 }
 0x767   : > { %p2786_p8 = por %p2785_p4, %p2784_p12 }
 0x768   : > { %p2782_p13 = pneg %p2781_p5 }
 0x769   : > { %p2788_p1 = por %p2787_p2, %p2786_p8 }
 0x76b   : > { %p2789_p0 = pnand %p2788_p1, %p2782_p13 }
 0x76d   : > { %2792 = shalt.err (!%p2789_p0)
}
 0x76e   : > { %2418 = dma.vmem_to_hbm [thread:$0]  (%p3698_p10), %s3609_s12, 32, %s3607_s13, %s1985_s20  }
 0x76f PF: > { %p2450_p6 = scmp.ge.s32.totalorder %s2855_s22, 2  ;;  %s2011_s27 = sand.u32 1, %s2835_s17  }
 0x770   : > { %p3699_p9 = scmp.ne.s32.totalorder %s3689_s29, 0  ;;  %s2012_s3 = scalar_lea.sflag [#allocation6], %s2011_s27 }
 0x772   : > { %p2438_p7 = pnand %p2450_p6, %p3699_p9 }
 0x774   : > { %2830 = dma.done.wait (!%p2438_p7), %s2012_s3, 32  }
 0x775   : > { %2832 = vsyncadd (!%p2438_p7), %s2012_s3, 4294967264  ;;  %s29_s22 = sadd.s32 1, %s2855_s22   ;;  %s3700_s17 = smov %s2839_s18 }
 0x776   : > { %p26_p3 = scmp.ge.s32.totalorder %s29_s22, 7   ;;  %s3701_s18 = smov %s2843_s19 }
 0x777   : > { %s3702_s19 = smov %s3116_s26  ;;  %s3703_s20 = smov %s2851_s21 }
 0x778   : > { %s3704_s21 = smov %s3706_s28  ;;  %28 = sbr.rel (!%p26_p3) target bundleno = 14 (0xe), region = 143 }
 0x77f   :  { %2017 = vsyncpa [#allocation5], 1 }
 0x780   :  { %2019 = vsyncpa [#allocation5 + $0x1], 1 }
 0x781   :  { %2020 = vsyncpa [#allocation8], 1 }
 0x782   :  { %2021 = vsyncpa [#allocation11], 1 }
 0x783   :  { %2022 = vsyncpa [#allocation6], 1 }
 0x784   :  { %2024 = vsyncpa [#allocation6 + $0x1], 1 }

</bundles_post_ra>
